<compile_context>
chip_gen: v7x
topology: tpu7x:2x2x1
jax: 0.10.0
libtpu: 0.0.40
codegen_flags: <defaults>
</compile_context>

<pallas_src>
import functools

import jax
import jax.numpy as jnp
from jax.experimental import pallas as pl
from jax.experimental.pallas import tpu as pltpu


# ---------------------------------------------------------------------------
# Fused Pallas kernel
# ---------------------------------------------------------------------------
def _diff_decoder_kernel(high_ref, diff_ref, b1_ref, s1_ref, b2_ref, s2_ref,
                         wseg_ref, bseg_ref, feat_ref, pred_ref,
                         pad1, pad2, upf, upp, *, H, W, Cin, Cmid, Cout, NC):
    f32 = jnp.float32

    # Zero-padded conv staging buffers.  Re-zeroed every grid step so the
    # kernel carries no cross-step scratch state (safe under megacore /
    # core-parallel grid sharding).  Cost is a few KiB of VPU stores.
    pad1[...] = jnp.zeros(pad1.shape, f32)
    pad2[...] = jnp.zeros(pad2.shape, f32)

    # -- stage 1: sigmoid gate, written straight into conv1's padded buffer.
    h = high_ref[0]                                    # (H, W*Cin) lane-dense
    d = diff_ref[0]
    pad1[1:H + 1, Cin:(W + 1) * Cin] = jax.nn.sigmoid(d) * h + h

    # -- stages 2/3: 3x3 conv + folded BN + ReLU as three banded matmuls on
    #    lane-dense rows: out = sum_kh pad[kh:kh+H, :] @ B_kh, B_kh built in
    #    the wrapper (K=(W+2)*Cin, N=W*Cout).
    def conv3x3(pad_ref, band_ref, shift_ref):
        acc = jnp.dot(pad_ref[0:H, :], band_ref[0], preferred_element_type=f32)
        acc = acc + jnp.dot(pad_ref[1:H + 1, :], band_ref[1],
                            preferred_element_type=f32)
        acc = acc + jnp.dot(pad_ref[2:H + 2, :], band_ref[2],
                            preferred_element_type=f32)
        return jnp.maximum(acc + shift_ref[...], 0.0)

    y1 = conv3x3(pad1, b1_ref, s1_ref)                 # (H, W*Cmid)
    pad2[1:H + 1, Cmid:(W + 1) * Cmid] = y1
    z = conv3x3(pad2, b2_ref, s2_ref)                  # (H, W*Cout)

    # -- stage 4: seg head (1x1 conv + bias) as one block-diagonal matmul.
    p = jnp.dot(z, wseg_ref[...], preferred_element_type=f32) + bseg_ref[...]

    # -- stage 5: 2x bilinear upsample (align_corners=False), phase-decomposed:
    #    out[2i+a, 2j+b] = 0.5625*c + 0.1875*(row-nbr + col-nbr) + 0.0625*diag
    #    of the clamp-padded source.  Stored as 4 lane-dense phase planes.
    def upsample2x(y, pad_ref, C, out_ref):
        L = W * C
        pad_ref[1:H + 1, C:C + L] = y
        pad_ref[0:1, C:C + L] = y[0:1, :]              # clamp top row
        pad_ref[H + 1:H + 2, C:C + L] = y[H - 1:H, :]  # clamp bottom row
        pad_ref[:, 0:C] = pad_ref[:, C:2 * C]          # clamp left col (+corners)
        pad_ref[:, (W + 1) * C:(W + 2) * C] = pad_ref[:, W * C:(W + 1) * C]

        ctr = pad_ref[1:H + 1, C:C + L]
        up = pad_ref[0:H, C:C + L]
        dn = pad_ref[2:H + 2, C:C + L]
        lf = pad_ref[1:H + 1, 0:L]
        rt = pad_ref[1:H + 1, 2 * C:2 * C + L]
        ul = pad_ref[0:H, 0:L]
        ur = pad_ref[0:H, 2 * C:2 * C + L]
        dl = pad_ref[2:H + 2, 0:L]
        dr = pad_ref[2:H + 2, 2 * C:2 * C + L]

        out_ref[0, 0] = 0.5625 * ctr + 0.1875 * (up + lf) + 0.0625 * ul  # (even,even)
        out_ref[0, 1] = 0.5625 * ctr + 0.1875 * (up + rt) + 0.0625 * ur  # (even,odd)
        out_ref[0, 2] = 0.5625 * ctr + 0.1875 * (dn + lf) + 0.0625 * dl  # (odd,even)
        out_ref[0, 3] = 0.5625 * ctr + 0.1875 * (dn + rt) + 0.0625 * dr  # (odd,odd)

    upsample2x(z, upf, Cout, feat_ref)
    upsample2x(p, upp, NC, pred_ref)


# ---------------------------------------------------------------------------
# Wrapper: weight preprocessing + pallas_call plumbing + layout glue
# ---------------------------------------------------------------------------
def _banded_conv_weights(w_hwio, bn_scale, bn_shift, W):
    """Fold BN scale into the 3x3 conv weight and lay it out as three banded
    matrices B_kh of shape ((W+2)*Cin, W*Cout), so the conv over lane-dense
    zero-padded rows is  sum_kh  rows[kh:kh+H, :] @ B_kh."""
    KH, KW, CI, CO = w_hwio.shape
    wf = w_hwio * bn_scale.reshape(1, 1, 1, CO)
    pp = jnp.arange(W + 2)[:, None, None]
    ww = jnp.arange(W)[None, :, None]
    kk = jnp.arange(KW)[None, None, :]
    ind = (pp - ww == kk).astype(jnp.float32)                 # (W+2, W, KW)
    band = jnp.einsum("pwk,hkio->hpiwo", ind, wf)             # (KH, W+2, CI, W, CO)
    band = band.reshape(KH, (W + 2) * CI, W * CO)
    shift_row = jnp.tile(bn_shift.reshape(-1), W).reshape(1, W * CO)
    return band, shift_row


def diff_decoder_forward(params, high_nchw, diff_nchw):
    B, Cin, H, W = high_nchw.shape
    Cmid = params["conv1_w"].shape[-1]
    Cout = params["conv2_w"].shape[-1]
    NC = params["seg_w"].shape[-1]

    # NCHW (PyTorch) -> lane-dense (B, H, W*C)
    high2d = jnp.transpose(high_nchw, (0, 2, 3, 1)).reshape(B, H, W * Cin)
    diff2d = jnp.transpose(diff_nchw, (0, 2, 3, 1)).reshape(B, H, W * Cin)

    b1, s1 = _banded_conv_weights(params["conv1_w"], params["bn1_scale"],
                                  params["bn1_shift"], W)
    b2, s2 = _banded_conv_weights(params["conv2_w"], params["bn2_scale"],
                                  params["bn2_shift"], W)
    wseg = jnp.kron(jnp.eye(W, dtype=jnp.float32), params["seg_w"])  # (W*Cout, W*NC)
    bseg = jnp.tile(params["seg_b"].reshape(-1), W).reshape(1, W * NC)

    kernel = functools.partial(_diff_decoder_kernel, H=H, W=W, Cin=Cin,
                               Cmid=Cmid, Cout=Cout, NC=NC)

    feat4, pred4 = pl.pallas_call(
        kernel,
        out_shape=(jax.ShapeDtypeStruct((B, 4, H, W * Cout), jnp.float32),
                   jax.ShapeDtypeStruct((B, 4, H, W * NC), jnp.float32)),
        grid=(B,),
        in_specs=[
            pl.BlockSpec((1, H, W * Cin), lambda b: (b, 0, 0)),
            pl.BlockSpec((1, H, W * Cin), lambda b: (b, 0, 0)),
            pl.BlockSpec((3, (W + 2) * Cin, W * Cmid), lambda b: (0, 0, 0)),
            pl.BlockSpec((1, W * Cmid), lambda b: (0, 0)),
            pl.BlockSpec((3, (W + 2) * Cmid, W * Cout), lambda b: (0, 0, 0)),
            pl.BlockSpec((1, W * Cout), lambda b: (0, 0)),
            pl.BlockSpec((W * Cout, W * NC), lambda b: (0, 0)),
            pl.BlockSpec((1, W * NC), lambda b: (0, 0)),
        ],
        out_specs=(
            pl.BlockSpec((1, 4, H, W * Cout), lambda b: (b, 0, 0, 0)),
            pl.BlockSpec((1, 4, H, W * NC), lambda b: (b, 0, 0, 0)),
        ),
        scratch_shapes=[
            pltpu.VMEM((H + 2, (W + 2) * Cin), jnp.float32),   # conv1 zero-pad
            pltpu.VMEM((H + 2, (W + 2) * Cmid), jnp.float32),  # conv2 zero-pad
            pltpu.VMEM((H + 2, (W + 2) * Cout), jnp.float32),  # feat clamp-pad
            pltpu.VMEM((H + 2, (W + 2) * NC), jnp.float32),    # pred clamp-pad
        ],
        compiler_params=pltpu.CompilerParams(dimension_semantics=("parallel",)),
    )(high2d, diff2d, b1, s1, b2, s2, wseg, bseg)

    # Phase planes (B, 2x2, H, W*C) -> NCHW (B, C, 2H, 2W); the unavoidable
    # output transpose to PyTorch's NCHW convention is fused with the phase
    # interleave in a single XLA copy.
    def unphase(x4, C):
        x6 = x4.reshape(B, 2, 2, H, W, C)
        x6 = jnp.transpose(x6, (0, 5, 3, 1, 4, 2))     # (B, C, H, a, W, b)
        return x6.reshape(B, C, 2 * H, 2 * W)

    return unphase(feat4, Cout), unphase(pred4, NC)


# ---------------------------------------------------------------------------
# Parameters (deterministic synthetic init)
# ---------------------------------------------------------------------------
def init_params(key, high_channel, middle_channel, out_channel, num_classes):
    k1, k2, k3 = jax.random.split(key, 3)

    def conv_w(k, kh, kw, cin, cout):
        fan_in = kh * kw * cin
        return jax.random.normal(k, (kh, kw, cin, cout), jnp.float32) / jnp.sqrt(fan_in)

    def bn_fold(c, offset):
        gamma = 1.0 + 0.05 * jnp.arange(c, dtype=jnp.float32)
        beta = 0.02 * jnp.arange(c, dtype=jnp.float32) + offset
        mean = 0.01 * jnp.arange(c, dtype=jnp.float32)
        var = 1.0 + 0.03 * jnp.arange(c, dtype=jnp.float32)
        scale = gamma / jnp.sqrt(var + 1e-5)
        shift = beta - mean * scale
        return scale.reshape(1, c), shift.reshape(1, c)

    params = {
        "conv1_w": conv_w(k1, 3, 3, high_channel, middle_channel),
        "conv2_w": conv_w(k2, 3, 3, middle_channel, out_channel),
        "seg_w": conv_w(k3, 1, 1, out_channel, num_classes)[0, 0],
        "seg_b": 0.01 * jnp.arange(num_classes, dtype=jnp.float32).reshape(1, num_classes),
    }
    params["bn1_scale"], params["bn1_shift"] = bn_fold(middle_channel, 0.0)
    params["bn2_scale"], params["bn2_shift"] = bn_fold(out_channel, 0.1)
    return params


# ---------------------------------------------------------------------------
# Pure-JAX reference (for correctness checking of the Pallas kernel)
# ---------------------------------------------------------------------------
def bilinear_matrix(n_in, scale=2):
    """Interp matrix (n_in*scale, n_in) for bilinear, align_corners=False."""
    n_out = n_in * scale
    dst = jnp.arange(n_out, dtype=jnp.float32)
    src = (dst + 0.5) / scale - 0.5
    i0 = jnp.floor(src)
    frac = src - i0
    i0c = jnp.clip(i0, 0, n_in - 1).astype(jnp.int32)
    i1c = jnp.clip(i0 + 1, 0, n_in - 1).astype(jnp.int32)
    rows = jnp.arange(n_out)
    m = jnp.zeros((n_out, n_in), jnp.float32)
    m = m.at[rows, i0c].add(1.0 - frac)
    m = m.at[rows, i1c].add(frac)
    return m


def reference_forward(params, high_nchw, diff_nchw):
    hp = jax.lax.Precision.HIGHEST
    high = jnp.transpose(high_nchw, (0, 2, 3, 1))
    diff = jnp.transpose(diff_nchw, (0, 2, 3, 1))
    x = jax.nn.sigmoid(diff) * high + high

    def conv_bn_relu(x, w, s, sh):
        y = jax.lax.conv_general_dilated(
            x, w, (1, 1), "SAME",
            dimension_numbers=("NHWC", "HWIO", "NHWC"), precision=hp)
        y = y * s.reshape(1, 1, 1, -1) + sh.reshape(1, 1, 1, -1)
        return jnp.maximum(y, 0.0)

    x = conv_bn_relu(x, params["conv1_w"], params["bn1_scale"], params["bn1_shift"])
    x = conv_bn_relu(x, params["conv2_w"], params["bn2_scale"], params["bn2_shift"])
    predict = (jnp.einsum("bhwc,cn->bhwn", x, params["seg_w"], precision=hp)
               + params["seg_b"].reshape(1, 1, 1, -1))

    def up(y):
        _, H, W, _ = y.shape
        return jnp.einsum("oh,pw,bhwc->bopc", bilinear_matrix(H),
                          bilinear_matrix(W), y, precision=hp)

    return (jnp.transpose(up(x), (0, 3, 1, 2)),
            jnp.transpose(up(predict), (0, 3, 1, 2)))


if __name__ == "__main__":
    key = jax.random.PRNGKey(0)
    kh, kd, kp = jax.random.split(key, 3)

    B, high_channel, H, W = 2, 4, 16, 16
    middle_channel, out_channel, num_classes = 8, 8, 4

    high = jax.random.normal(kh, (B, high_channel, H, W), jnp.float32)
    diff = jax.random.normal(kd, (B, high_channel, H, W), jnp.float32)
    params = init_params(kp, high_channel, middle_channel, out_channel, num_classes)

    fwd = jax.jit(diff_decoder_forward)
    feat, pred = fwd(params, high, diff)
    jax.block_until_ready((feat, pred))

    assert feat.shape == (B, out_channel, 2 * H, 2 * W)
    assert pred.shape == (B, num_classes, 2 * H, 2 * W)

    ref_feat, ref_pred = reference_forward(params, high, diff)
    assert jnp.allclose(feat, ref_feat, rtol=1e-3, atol=1e-3)
    assert jnp.allclose(pred, ref_pred, rtol=1e-3, atol=1e-3)

    print("KERNEL_OK")
</pallas_src>

<mosaic_0001>
module attributes {stable_mosaic.version = 11 : i64} {
  func.func @_diff_decoder_kernel(%arg0: i32, %arg1: memref<1x16x64xf32, #tpu.memory_space<vmem>>, %arg2: memref<1x16x64xf32, #tpu.memory_space<vmem>>, %arg3: memref<3x72x128xf32, #tpu.memory_space<vmem>>, %arg4: memref<1x128xf32, #tpu.memory_space<vmem>>, %arg5: memref<3x144x128xf32, #tpu.memory_space<vmem>>, %arg6: memref<1x128xf32, #tpu.memory_space<vmem>>, %arg7: memref<128x64xf32, #tpu.memory_space<vmem>>, %arg8: memref<1x64xf32, #tpu.memory_space<vmem>>, %arg9: memref<1x4x16x128xf32, #tpu.memory_space<vmem>>, %arg10: memref<1x4x16x64xf32, #tpu.memory_space<vmem>>, %arg11: memref<18x72xf32, #tpu.memory_space<vmem>>, %arg12: memref<18x144xf32, #tpu.memory_space<vmem>>, %arg13: memref<18x144xf32, #tpu.memory_space<vmem>>, %arg14: memref<18x72xf32, #tpu.memory_space<vmem>>) attributes {dimension_semantics = [#tpu.dimension_semantics<parallel>], iteration_bounds = array<i64: 2>, scalar_prefetch = 0 : i64, scratch_operands = 4 : i64, tpu.core_type = #tpu.core_type<tc>, window_params = [{transform_indices = @transform_0, window_bounds = array<i64: 1, 16, 64>}, {transform_indices = @transform_1, window_bounds = array<i64: 1, 16, 64>}, {pipeline_mode = #tpu.pipeline_mode<synchronous>, transform_indices = @transform_2, window_bounds = array<i64: 3, 72, 128>}, {pipeline_mode = #tpu.pipeline_mode<synchronous>, transform_indices = @transform_3, window_bounds = array<i64: 1, 128>}, {pipeline_mode = #tpu.pipeline_mode<synchronous>, transform_indices = @transform_4, window_bounds = array<i64: 3, 144, 128>}, {pipeline_mode = #tpu.pipeline_mode<synchronous>, transform_indices = @transform_5, window_bounds = array<i64: 1, 128>}, {pipeline_mode = #tpu.pipeline_mode<synchronous>, transform_indices = @transform_6, window_bounds = array<i64: 128, 64>}, {pipeline_mode = #tpu.pipeline_mode<synchronous>, transform_indices = @transform_7, window_bounds = array<i64: 1, 64>}, {transform_indices = @transform_8, window_bounds = array<i64: 1, 4, 16, 128>}, {transform_indices = @transform_9, window_bounds = array<i64: 1, 4, 16, 64>}]} {
    %cst = arith.constant 0.000000e+00 : f32
    %0 = vector.broadcast %cst : f32 to vector<18x72xf32>
    %c0 = arith.constant 0 : index
    %c0_0 = arith.constant 0 : index
    %1 = vector.load %arg11[%c0, %c0_0] : memref<18x72xf32, #tpu.memory_space<vmem>>, vector<18x72xf32>
    tpu.vector_store %arg11[%c0, %c0_0], %0 {strides = array<i32>} : memref<18x72xf32, #tpu.memory_space<vmem>>, vector<18x72xf32>,
    %cst_1 = arith.constant 0.000000e+00 : f32
    %2 = vector.broadcast %cst_1 : f32 to vector<18x144xf32>
    %c0_2 = arith.constant 0 : index
    %c0_3 = arith.constant 0 : index
    %3 = vector.load %arg12[%c0_2, %c0_3] : memref<18x144xf32, #tpu.memory_space<vmem>>, vector<18x144xf32>
    tpu.vector_store %arg12[%c0_2, %c0_3], %2 {strides = array<i32>} : memref<18x144xf32, #tpu.memory_space<vmem>>, vector<18x144xf32>,
    %c0_4 = arith.constant 0 : index
    %c0_5 = arith.constant 0 : index
    %c0_6 = arith.constant 0 : index
    %4 = vector.load %arg1[%c0_4, %c0_5, %c0_6] : memref<1x16x64xf32, #tpu.memory_space<vmem>>, vector<1x16x64xf32>
    %5 = vector.shape_cast %4 : vector<1x16x64xf32> to vector<16x64xf32>
    %c0_7 = arith.constant 0 : index
    %c0_8 = arith.constant 0 : index
    %c0_9 = arith.constant 0 : index
    %6 = vector.load %arg2[%c0_7, %c0_8, %c0_9] : memref<1x16x64xf32, #tpu.memory_space<vmem>>, vector<1x16x64xf32>
    %7 = vector.shape_cast %6 : vector<1x16x64xf32> to vector<16x64xf32>
    %8 = arith.negf %7 : vector<16x64xf32>
    %9 = math.exp %8 : vector<16x64xf32>
    %cst_10 = arith.constant 1.000000e+00 : f32
    %10 = vector.broadcast %cst_10 : f32 to vector<16x64xf32>
    %11 = arith.addf %10, %9 : vector<16x64xf32>
    %12 = arith.divf %10, %11 : vector<16x64xf32>
    %13 = arith.mulf %12, %5 : vector<16x64xf32>
    %14 = arith.addf %13, %5 : vector<16x64xf32>
    %c1 = arith.constant 1 : index
    %c4 = arith.constant 4 : index
    %15 = vector.load %arg11[%c1, %c4] : memref<18x72xf32, #tpu.memory_space<vmem>>, vector<16x64xf32>
    tpu.vector_store %arg11[%c1, %c4], %14 {strides = array<i32>} : memref<18x72xf32, #tpu.memory_space<vmem>>, vector<16x64xf32>,
    %c0_11 = arith.constant 0 : index
    %c0_12 = arith.constant 0 : index
    %16 = vector.load %arg11[%c0_11, %c0_12] : memref<18x72xf32, #tpu.memory_space<vmem>>, vector<16x72xf32>
    %c0_13 = arith.constant 0 : index
    %c0_14 = arith.constant 0 : index
    %c0_15 = arith.constant 0 : index
    %17 = vector.load %arg3[%c0_13, %c0_14, %c0_15] : memref<3x72x128xf32, #tpu.memory_space<vmem>>, vector<1x72x128xf32>
    %18 = vector.shape_cast %17 : vector<1x72x128xf32> to vector<72x128xf32>
    %cst_16 = arith.constant dense<0.000000e+00> : vector<16x128xf32>
    %19 = tpu.matmul %16, %18, %cst_16 {dimension_numbers = #tpu.dot_dimension_numbers<[1], [0], [0], [1], [0, 0, 1, 1], [], []>} : vector<16x72xf32>, vector<72x128xf32>, vector<16x128xf32> -> vector<16x128xf32>
    %c1_17 = arith.constant 1 : index
    %c0_18 = arith.constant 0 : index
    %20 = vector.load %arg11[%c1_17, %c0_18] : memref<18x72xf32, #tpu.memory_space<vmem>>, vector<16x72xf32>
    %c1_19 = arith.constant 1 : index
    %c0_20 = arith.constant 0 : index
    %c0_21 = arith.constant 0 : index
    %21 = vector.load %arg3[%c1_19, %c0_20, %c0_21] : memref<3x72x128xf32, #tpu.memory_space<vmem>>, vector<1x72x128xf32>
    %22 = vector.shape_cast %21 : vector<1x72x128xf32> to vector<72x128xf32>
    %cst_22 = arith.constant dense<0.000000e+00> : vector<16x128xf32>
    %23 = tpu.matmul %20, %22, %cst_22 {dimension_numbers = #tpu.dot_dimension_numbers<[1], [0], [0], [1], [0, 0, 1, 1], [], []>} : vector<16x72xf32>, vector<72x128xf32>, vector<16x128xf32> -> vector<16x128xf32>
    %24 = arith.addf %19, %23 : vector<16x128xf32>
    %c2 = arith.constant 2 : index
    %c0_23 = arith.constant 0 : index
    %25 = vector.load %arg11[%c2, %c0_23] : memref<18x72xf32, #tpu.memory_space<vmem>>, vector<16x72xf32>
    %c2_24 = arith.constant 2 : index
    %c0_25 = arith.constant 0 : index
    %c0_26 = arith.constant 0 : index
    %26 = vector.load %arg3[%c2_24, %c0_25, %c0_26] : memref<3x72x128xf32, #tpu.memory_space<vmem>>, vector<1x72x128xf32>
    %27 = vector.shape_cast %26 : vector<1x72x128xf32> to vector<72x128xf32>
    %cst_27 = arith.constant dense<0.000000e+00> : vector<16x128xf32>
    %28 = tpu.matmul %25, %27, %cst_27 {dimension_numbers = #tpu.dot_dimension_numbers<[1], [0], [0], [1], [0, 0, 1, 1], [], []>} : vector<16x72xf32>, vector<72x128xf32>, vector<16x128xf32> -> vector<16x128xf32>
    %29 = arith.addf %24, %28 : vector<16x128xf32>
    %c0_28 = arith.constant 0 : index
    %c0_29 = arith.constant 0 : index
    %30 = vector.load %arg4[%c0_28, %c0_29] : memref<1x128xf32, #tpu.memory_space<vmem>>, vector<1x128xf32>
    %31 = vector.broadcast %30 : vector<1x128xf32> to vector<16x128xf32>
    %32 = arith.addf %29, %31 : vector<16x128xf32>
    %cst_30 = arith.constant 0.000000e+00 : f32
    %33 = vector.broadcast %cst_30 : f32 to vector<16x128xf32>
    %34 = arith.maximumf %32, %33 : vector<16x128xf32>
    %c1_31 = arith.constant 1 : index
    %c8 = arith.constant 8 : index
    %35 = vector.load %arg12[%c1_31, %c8] : memref<18x144xf32, #tpu.memory_space<vmem>>, vector<16x128xf32>
    tpu.vector_store %arg12[%c1_31, %c8], %34 {strides = array<i32>} : memref<18x144xf32, #tpu.memory_space<vmem>>, vector<16x128xf32>,
    %c0_32 = arith.constant 0 : index
    %c0_33 = arith.constant 0 : index
    %36 = vector.load %arg12[%c0_32, %c0_33] : memref<18x144xf32, #tpu.memory_space<vmem>>, vector<16x144xf32>
    %c0_34 = arith.constant 0 : index
    %c0_35 = arith.constant 0 : index
    %c0_36 = arith.constant 0 : index
    %37 = vector.load %arg5[%c0_34, %c0_35, %c0_36] : memref<3x144x128xf32, #tpu.memory_space<vmem>>, vector<1x144x128xf32>
    %38 = vector.shape_cast %37 : vector<1x144x128xf32> to vector<144x128xf32>
    %cst_37 = arith.constant dense<0.000000e+00> : vector<16x128xf32>
    %39 = tpu.matmul %36, %38, %cst_37 {dimension_numbers = #tpu.dot_dimension_numbers<[1], [0], [0], [1], [0, 0, 1, 1], [], []>} : vector<16x144xf32>, vector<144x128xf32>, vector<16x128xf32> -> vector<16x128xf32>
    %c1_38 = arith.constant 1 : index
    %c0_39 = arith.constant 0 : index
    %40 = vector.load %arg12[%c1_38, %c0_39] : memref<18x144xf32, #tpu.memory_space<vmem>>, vector<16x144xf32>
    %c1_40 = arith.constant 1 : index
    %c0_41 = arith.constant 0 : index
    %c0_42 = arith.constant 0 : index
    %41 = vector.load %arg5[%c1_40, %c0_41, %c0_42] : memref<3x144x128xf32, #tpu.memory_space<vmem>>, vector<1x144x128xf32>
    %42 = vector.shape_cast %41 : vector<1x144x128xf32> to vector<144x128xf32>
    %cst_43 = arith.constant dense<0.000000e+00> : vector<16x128xf32>
    %43 = tpu.matmul %40, %42, %cst_43 {dimension_numbers = #tpu.dot_dimension_numbers<[1], [0], [0], [1], [0, 0, 1, 1], [], []>} : vector<16x144xf32>, vector<144x128xf32>, vector<16x128xf32> -> vector<16x128xf32>
    %44 = arith.addf %39, %43 : vector<16x128xf32>
    %c2_44 = arith.constant 2 : index
    %c0_45 = arith.constant 0 : index
    %45 = vector.load %arg12[%c2_44, %c0_45] : memref<18x144xf32, #tpu.memory_space<vmem>>, vector<16x144xf32>
    %c2_46 = arith.constant 2 : index
    %c0_47 = arith.constant 0 : index
    %c0_48 = arith.constant 0 : index
    %46 = vector.load %arg5[%c2_46, %c0_47, %c0_48] : memref<3x144x128xf32, #tpu.memory_space<vmem>>, vector<1x144x128xf32>
    %47 = vector.shape_cast %46 : vector<1x144x128xf32> to vector<144x128xf32>
    %cst_49 = arith.constant dense<0.000000e+00> : vector<16x128xf32>
    %48 = tpu.matmul %45, %47, %cst_49 {dimension_numbers = #tpu.dot_dimension_numbers<[1], [0], [0], [1], [0, 0, 1, 1], [], []>} : vector<16x144xf32>, vector<144x128xf32>, vector<16x128xf32> -> vector<16x128xf32>
    %49 = arith.addf %44, %48 : vector<16x128xf32>
    %c0_50 = arith.constant 0 : index
    %c0_51 = arith.constant 0 : index
    %50 = vector.load %arg6[%c0_50, %c0_51] : memref<1x128xf32, #tpu.memory_space<vmem>>, vector<1x128xf32>
    %51 = vector.broadcast %50 : vector<1x128xf32> to vector<16x128xf32>
    %52 = arith.addf %49, %51 : vector<16x128xf32>
    %cst_52 = arith.constant 0.000000e+00 : f32
    %53 = vector.broadcast %cst_52 : f32 to vector<16x128xf32>
    %54 = arith.maximumf %52, %53 : vector<16x128xf32>
    %c0_53 = arith.constant 0 : index
    %c0_54 = arith.constant 0 : index
    %55 = vector.load %arg7[%c0_53, %c0_54] : memref<128x64xf32, #tpu.memory_space<vmem>>, vector<128x64xf32>
    %cst_55 = arith.constant dense<0.000000e+00> : vector<16x64xf32>
    %56 = tpu.matmul %54, %55, %cst_55 {dimension_numbers = #tpu.dot_dimension_numbers<[1], [0], [0], [1], [0, 0, 1, 1], [], []>} : vector<16x128xf32>, vector<128x64xf32>, vector<16x64xf32> -> vector<16x64xf32>
    %c0_56 = arith.constant 0 : index
    %c0_57 = arith.constant 0 : index
    %57 = vector.load %arg8[%c0_56, %c0_57] : memref<1x64xf32, #tpu.memory_space<vmem>>, vector<1x64xf32>
    %58 = vector.broadcast %57 : vector<1x64xf32> to vector<16x64xf32>
    %59 = arith.addf %56, %58 : vector<16x64xf32>
    %c1_58 = arith.constant 1 : index
    %c8_59 = arith.constant 8 : index
    %60 = vector.load %arg13[%c1_58, %c8_59] : memref<18x144xf32, #tpu.memory_space<vmem>>, vector<16x128xf32>
    tpu.vector_store %arg13[%c1_58, %c8_59], %54 {strides = array<i32>} : memref<18x144xf32, #tpu.memory_space<vmem>>, vector<16x128xf32>,
    %61 = vector.extract_strided_slice %54 {offsets = [0, 0], sizes = [1, 128], strides = [1, 1]} : vector<16x128xf32> to vector<1x128xf32>
    %c0_60 = arith.constant 0 : index
    %c8_61 = arith.constant 8 : index
    %62 = vector.load %arg13[%c0_60, %c8_61] : memref<18x144xf32, #tpu.memory_space<vmem>>, vector<1x128xf32>
    tpu.vector_store %arg13[%c0_60, %c8_61], %61 {strides = array<i32>} : memref<18x144xf32, #tpu.memory_space<vmem>>, vector<1x128xf32>,
    %63 = vector.extract_strided_slice %54 {offsets = [15, 0], sizes = [1, 128], strides = [1, 1]} : vector<16x128xf32> to vector<1x128xf32>
    %c17 = arith.constant 17 : index
    %c8_62 = arith.constant 8 : index
    %64 = vector.load %arg13[%c17, %c8_62] : memref<18x144xf32, #tpu.memory_space<vmem>>, vector<1x128xf32>
    tpu.vector_store %arg13[%c17, %c8_62], %63 {strides = array<i32>} : memref<18x144xf32, #tpu.memory_space<vmem>>, vector<1x128xf32>,
    %c0_63 = arith.constant 0 : index
    %c8_64 = arith.constant 8 : index
    %65 = vector.load %arg13[%c0_63, %c8_64] : memref<18x144xf32, #tpu.memory_space<vmem>>, vector<18x8xf32>
    %c0_65 = arith.constant 0 : index
    %c0_66 = arith.constant 0 : index
    %66 = vector.load %arg13[%c0_65, %c0_66] : memref<18x144xf32, #tpu.memory_space<vmem>>, vector<18x8xf32>
    tpu.vector_store %arg13[%c0_65, %c0_66], %65 {strides = array<i32>} : memref<18x144xf32, #tpu.memory_space<vmem>>, vector<18x8xf32>,
    %c0_67 = arith.constant 0 : index
    %c128 = arith.constant 128 : index
    %67 = vector.load %arg13[%c0_67, %c128] : memref<18x144xf32, #tpu.memory_space<vmem>>, vector<18x8xf32>
    %c0_68 = arith.constant 0 : index
    %c136 = arith.constant 136 : index
    %68 = vector.load %arg13[%c0_68, %c136] : memref<18x144xf32, #tpu.memory_space<vmem>>, vector<18x8xf32>
    tpu.vector_store %arg13[%c0_68, %c136], %67 {strides = array<i32>} : memref<18x144xf32, #tpu.memory_space<vmem>>, vector<18x8xf32>,
    %c1_69 = arith.constant 1 : index
    %c8_70 = arith.constant 8 : index
    %69 = vector.load %arg13[%c1_69, %c8_70] : memref<18x144xf32, #tpu.memory_space<vmem>>, vector<16x128xf32>
    %c0_71 = arith.constant 0 : index
    %c8_72 = arith.constant 8 : index
    %70 = vector.load %arg13[%c0_71, %c8_72] : memref<18x144xf32, #tpu.memory_space<vmem>>, vector<16x128xf32>
    %c2_73 = arith.constant 2 : index
    %c8_74 = arith.constant 8 : index
    %71 = vector.load %arg13[%c2_73, %c8_74] : memref<18x144xf32, #tpu.memory_space<vmem>>, vector<16x128xf32>
    %c1_75 = arith.constant 1 : index
    %c0_76 = arith.constant 0 : index
    %72 = vector.load %arg13[%c1_75, %c0_76] : memref<18x144xf32, #tpu.memory_space<vmem>>, vector<16x128xf32>
    %c1_77 = arith.constant 1 : index
    %c16 = arith.constant 16 : index
    %73 = vector.load %arg13[%c1_77, %c16] : memref<18x144xf32, #tpu.memory_space<vmem>>, vector<16x128xf32>
    %c0_78 = arith.constant 0 : index
    %c0_79 = arith.constant 0 : index
    %74 = vector.load %arg13[%c0_78, %c0_79] : memref<18x144xf32, #tpu.memory_space<vmem>>, vector<16x128xf32>
    %c0_80 = arith.constant 0 : index
    %c16_81 = arith.constant 16 : index
    %75 = vector.load %arg13[%c0_80, %c16_81] : memref<18x144xf32, #tpu.memory_space<vmem>>, vector<16x128xf32>
    %c2_82 = arith.constant 2 : index
    %c0_83 = arith.constant 0 : index
    %76 = vector.load %arg13[%c2_82, %c0_83] : memref<18x144xf32, #tpu.memory_space<vmem>>, vector<16x128xf32>
    %c2_84 = arith.constant 2 : index
    %c16_85 = arith.constant 16 : index
    %77 = vector.load %arg13[%c2_84, %c16_85] : memref<18x144xf32, #tpu.memory_space<vmem>>, vector<16x128xf32>
    %cst_86 = arith.constant 5.625000e-01 : f32
    %78 = vector.broadcast %cst_86 : f32 to vector<16x128xf32>
    %79 = arith.mulf %78, %69 : vector<16x128xf32>
    %80 = arith.addf %70, %72 : vector<16x128xf32>
    %cst_87 = arith.constant 1.875000e-01 : f32
    %81 = vector.broadcast %cst_87 : f32 to vector<16x128xf32>
    %82 = arith.mulf %81, %80 : vector<16x128xf32>
    %83 = arith.addf %79, %82 : vector<16x128xf32>
    %cst_88 = arith.constant 6.250000e-02 : f32
    %84 = vector.broadcast %cst_88 : f32 to vector<16x128xf32>
    %85 = arith.mulf %84, %74 : vector<16x128xf32>
    %86 = arith.addf %83, %85 : vector<16x128xf32>
    %c0_89 = arith.constant 0 : index
    %c0_90 = arith.constant 0 : index
    %c0_91 = arith.constant 0 : index
    %c0_92 = arith.constant 0 : index
    %87 = vector.load %arg9[%c0_89, %c0_90, %c0_91, %c0_92] : memref<1x4x16x128xf32, #tpu.memory_space<vmem>>, vector<1x1x16x128xf32>
    %88 = vector.shape_cast %87 : vector<1x1x16x128xf32> to vector<16x128xf32>
    %89 = vector.shape_cast %86 : vector<16x128xf32> to vector<1x1x16x128xf32>
    tpu.vector_store %arg9[%c0_89, %c0_90, %c0_91, %c0_92], %89 {strides = array<i32>} : memref<1x4x16x128xf32, #tpu.memory_space<vmem>>, vector<1x1x16x128xf32>,
    %cst_93 = arith.constant 5.625000e-01 : f32
    %90 = vector.broadcast %cst_93 : f32 to vector<16x128xf32>
    %91 = arith.mulf %90, %69 : vector<16x128xf32>
    %92 = arith.addf %70, %73 : vector<16x128xf32>
    %cst_94 = arith.constant 1.875000e-01 : f32
    %93 = vector.broadcast %cst_94 : f32 to vector<16x128xf32>
    %94 = arith.mulf %93, %92 : vector<16x128xf32>
    %95 = arith.addf %91, %94 : vector<16x128xf32>
    %cst_95 = arith.constant 6.250000e-02 : f32
    %96 = vector.broadcast %cst_95 : f32 to vector<16x128xf32>
    %97 = arith.mulf %96, %75 : vector<16x128xf32>
    %98 = arith.addf %95, %97 : vector<16x128xf32>
    %c0_96 = arith.constant 0 : index
    %c1_97 = arith.constant 1 : index
    %c0_98 = arith.constant 0 : index
    %c0_99 = arith.constant 0 : index
    %99 = vector.load %arg9[%c0_96, %c1_97, %c0_98, %c0_99] : memref<1x4x16x128xf32, #tpu.memory_space<vmem>>, vector<1x1x16x128xf32>
    %100 = vector.shape_cast %99 : vector<1x1x16x128xf32> to vector<16x128xf32>
    %101 = vector.shape_cast %98 : vector<16x128xf32> to vector<1x1x16x128xf32>
    tpu.vector_store %arg9[%c0_96, %c1_97, %c0_98, %c0_99], %101 {strides = array<i32>} : memref<1x4x16x128xf32, #tpu.memory_space<vmem>>, vector<1x1x16x128xf32>,
    %cst_100 = arith.constant 5.625000e-01 : f32
    %102 = vector.broadcast %cst_100 : f32 to vector<16x128xf32>
    %103 = arith.mulf %102, %69 : vector<16x128xf32>
    %104 = arith.addf %71, %72 : vector<16x128xf32>
    %cst_101 = arith.constant 1.875000e-01 : f32
    %105 = vector.broadcast %cst_101 : f32 to vector<16x128xf32>
    %106 = arith.mulf %105, %104 : vector<16x128xf32>
    %107 = arith.addf %103, %106 : vector<16x128xf32>
    %cst_102 = arith.constant 6.250000e-02 : f32
    %108 = vector.broadcast %cst_102 : f32 to vector<16x128xf32>
    %109 = arith.mulf %108, %76 : vector<16x128xf32>
    %110 = arith.addf %107, %109 : vector<16x128xf32>
    %c0_103 = arith.constant 0 : index
    %c2_104 = arith.constant 2 : index
    %c0_105 = arith.constant 0 : index
    %c0_106 = arith.constant 0 : index
    %111 = vector.load %arg9[%c0_103, %c2_104, %c0_105, %c0_106] : memref<1x4x16x128xf32, #tpu.memory_space<vmem>>, vector<1x1x16x128xf32>
    %112 = vector.shape_cast %111 : vector<1x1x16x128xf32> to vector<16x128xf32>
    %113 = vector.shape_cast %110 : vector<16x128xf32> to vector<1x1x16x128xf32>
    tpu.vector_store %arg9[%c0_103, %c2_104, %c0_105, %c0_106], %113 {strides = array<i32>} : memref<1x4x16x128xf32, #tpu.memory_space<vmem>>, vector<1x1x16x128xf32>,
    %cst_107 = arith.constant 5.625000e-01 : f32
    %114 = vector.broadcast %cst_107 : f32 to vector<16x128xf32>
    %115 = arith.mulf %114, %69 : vector<16x128xf32>
    %116 = arith.addf %71, %73 : vector<16x128xf32>
    %cst_108 = arith.constant 1.875000e-01 : f32
    %117 = vector.broadcast %cst_108 : f32 to vector<16x128xf32>
    %118 = arith.mulf %117, %116 : vector<16x128xf32>
    %119 = arith.addf %115, %118 : vector<16x128xf32>
    %cst_109 = arith.constant 6.250000e-02 : f32
    %120 = vector.broadcast %cst_109 : f32 to vector<16x128xf32>
    %121 = arith.mulf %120, %77 : vector<16x128xf32>
    %122 = arith.addf %119, %121 : vector<16x128xf32>
    %c0_110 = arith.constant 0 : index
    %c3 = arith.constant 3 : index
    %c0_111 = arith.constant 0 : index
    %c0_112 = arith.constant 0 : index
    %123 = vector.load %arg9[%c0_110, %c3, %c0_111, %c0_112] : memref<1x4x16x128xf32, #tpu.memory_space<vmem>>, vector<1x1x16x128xf32>
    %124 = vector.shape_cast %123 : vector<1x1x16x128xf32> to vector<16x128xf32>
    %125 = vector.shape_cast %122 : vector<16x128xf32> to vector<1x1x16x128xf32>
    tpu.vector_store %arg9[%c0_110, %c3, %c0_111, %c0_112], %125 {strides = array<i32>} : memref<1x4x16x128xf32, #tpu.memory_space<vmem>>, vector<1x1x16x128xf32>,
    %c1_113 = arith.constant 1 : index
    %c4_114 = arith.constant 4 : index
    %126 = vector.load %arg14[%c1_113, %c4_114] : memref<18x72xf32, #tpu.memory_space<vmem>>, vector<16x64xf32>
    tpu.vector_store %arg14[%c1_113, %c4_114], %59 {strides = array<i32>} : memref<18x72xf32, #tpu.memory_space<vmem>>, vector<16x64xf32>,
    %127 = vector.extract_strided_slice %59 {offsets = [0, 0], sizes = [1, 64], strides = [1, 1]} : vector<16x64xf32> to vector<1x64xf32>
    %c0_115 = arith.constant 0 : index
    %c4_116 = arith.constant 4 : index
    %128 = vector.load %arg14[%c0_115, %c4_116] : memref<18x72xf32, #tpu.memory_space<vmem>>, vector<1x64xf32>
    tpu.vector_store %arg14[%c0_115, %c4_116], %127 {strides = array<i32>} : memref<18x72xf32, #tpu.memory_space<vmem>>, vector<1x64xf32>,
    %129 = vector.extract_strided_slice %59 {offsets = [15, 0], sizes = [1, 64], strides = [1, 1]} : vector<16x64xf32> to vector<1x64xf32>
    %c17_117 = arith.constant 17 : index
    %c4_118 = arith.constant 4 : index
    %130 = vector.load %arg14[%c17_117, %c4_118] : memref<18x72xf32, #tpu.memory_space<vmem>>, vector<1x64xf32>
    tpu.vector_store %arg14[%c17_117, %c4_118], %129 {strides = array<i32>} : memref<18x72xf32, #tpu.memory_space<vmem>>, vector<1x64xf32>,
    %c0_119 = arith.constant 0 : index
    %c4_120 = arith.constant 4 : index
    %131 = vector.load %arg14[%c0_119, %c4_120] : memref<18x72xf32, #tpu.memory_space<vmem>>, vector<18x4xf32>
    %c0_121 = arith.constant 0 : index
    %c0_122 = arith.constant 0 : index
    %132 = vector.load %arg14[%c0_121, %c0_122] : memref<18x72xf32, #tpu.memory_space<vmem>>, vector<18x4xf32>
    tpu.vector_store %arg14[%c0_121, %c0_122], %131 {strides = array<i32>} : memref<18x72xf32, #tpu.memory_space<vmem>>, vector<18x4xf32>,
    %c0_123 = arith.constant 0 : index
    %c64 = arith.constant 64 : index
    %133 = vector.load %arg14[%c0_123, %c64] : memref<18x72xf32, #tpu.memory_space<vmem>>, vector<18x4xf32>
    %c0_124 = arith.constant 0 : index
    %c68 = arith.constant 68 : index
    %134 = vector.load %arg14[%c0_124, %c68] : memref<18x72xf32, #tpu.memory_space<vmem>>, vector<18x4xf32>
    tpu.vector_store %arg14[%c0_124, %c68], %133 {strides = array<i32>} : memref<18x72xf32, #tpu.memory_space<vmem>>, vector<18x4xf32>,
    %c1_125 = arith.constant 1 : index
    %c4_126 = arith.constant 4 : index
    %135 = vector.load %arg14[%c1_125, %c4_126] : memref<18x72xf32, #tpu.memory_space<vmem>>, vector<16x64xf32>
    %c0_127 = arith.constant 0 : index
    %c4_128 = arith.constant 4 : index
    %136 = vector.load %arg14[%c0_127, %c4_128] : memref<18x72xf32, #tpu.memory_space<vmem>>, vector<16x64xf32>
    %c2_129 = arith.constant 2 : index
    %c4_130 = arith.constant 4 : index
    %137 = vector.load %arg14[%c2_129, %c4_130] : memref<18x72xf32, #tpu.memory_space<vmem>>, vector<16x64xf32>
    %c1_131 = arith.constant 1 : index
    %c0_132 = arith.constant 0 : index
    %138 = vector.load %arg14[%c1_131, %c0_132] : memref<18x72xf32, #tpu.memory_space<vmem>>, vector<16x64xf32>
    %c1_133 = arith.constant 1 : index
    %c8_134 = arith.constant 8 : index
    %139 = vector.load %arg14[%c1_133, %c8_134] : memref<18x72xf32, #tpu.memory_space<vmem>>, vector<16x64xf32>
    %c0_135 = arith.constant 0 : index
    %c0_136 = arith.constant 0 : index
    %140 = vector.load %arg14[%c0_135, %c0_136] : memref<18x72xf32, #tpu.memory_space<vmem>>, vector<16x64xf32>
    %c0_137 = arith.constant 0 : index
    %c8_138 = arith.constant 8 : index
    %141 = vector.load %arg14[%c0_137, %c8_138] : memref<18x72xf32, #tpu.memory_space<vmem>>, vector<16x64xf32>
    %c2_139 = arith.constant 2 : index
    %c0_140 = arith.constant 0 : index
    %142 = vector.load %arg14[%c2_139, %c0_140] : memref<18x72xf32, #tpu.memory_space<vmem>>, vector<16x64xf32>
    %c2_141 = arith.constant 2 : index
    %c8_142 = arith.constant 8 : index
    %143 = vector.load %arg14[%c2_141, %c8_142] : memref<18x72xf32, #tpu.memory_space<vmem>>, vector<16x64xf32>
    %cst_143 = arith.constant 5.625000e-01 : f32
    %144 = vector.broadcast %cst_143 : f32 to vector<16x64xf32>
    %145 = arith.mulf %144, %135 : vector<16x64xf32>
    %146 = arith.addf %136, %138 : vector<16x64xf32>
    %cst_144 = arith.constant 1.875000e-01 : f32
    %147 = vector.broadcast %cst_144 : f32 to vector<16x64xf32>
    %148 = arith.mulf %147, %146 : vector<16x64xf32>
    %149 = arith.addf %145, %148 : vector<16x64xf32>
    %cst_145 = arith.constant 6.250000e-02 : f32
    %150 = vector.broadcast %cst_145 : f32 to vector<16x64xf32>
    %151 = arith.mulf %150, %140 : vector<16x64xf32>
    %152 = arith.addf %149, %151 : vector<16x64xf32>
    %c0_146 = arith.constant 0 : index
    %c0_147 = arith.constant 0 : index
    %c0_148 = arith.constant 0 : index
    %c0_149 = arith.constant 0 : index
    %153 = vector.load %arg10[%c0_146, %c0_147, %c0_148, %c0_149] : memref<1x4x16x64xf32, #tpu.memory_space<vmem>>, vector<1x1x16x64xf32>
    %154 = vector.shape_cast %153 : vector<1x1x16x64xf32> to vector<16x64xf32>
    %155 = vector.shape_cast %152 : vector<16x64xf32> to vector<1x1x16x64xf32>
    tpu.vector_store %arg10[%c0_146, %c0_147, %c0_148, %c0_149], %155 {strides = array<i32>} : memref<1x4x16x64xf32, #tpu.memory_space<vmem>>, vector<1x1x16x64xf32>,
    %cst_150 = arith.constant 5.625000e-01 : f32
    %156 = vector.broadcast %cst_150 : f32 to vector<16x64xf32>
    %157 = arith.mulf %156, %135 : vector<16x64xf32>
    %158 = arith.addf %136, %139 : vector<16x64xf32>
    %cst_151 = arith.constant 1.875000e-01 : f32
    %159 = vector.broadcast %cst_151 : f32 to vector<16x64xf32>
    %160 = arith.mulf %159, %158 : vector<16x64xf32>
    %161 = arith.addf %157, %160 : vector<16x64xf32>
    %cst_152 = arith.constant 6.250000e-02 : f32
    %162 = vector.broadcast %cst_152 : f32 to vector<16x64xf32>
    %163 = arith.mulf %162, %141 : vector<16x64xf32>
    %164 = arith.addf %161, %163 : vector<16x64xf32>
    %c0_153 = arith.constant 0 : index
    %c1_154 = arith.constant 1 : index
    %c0_155 = arith.constant 0 : index
    %c0_156 = arith.constant 0 : index
    %165 = vector.load %arg10[%c0_153, %c1_154, %c0_155, %c0_156] : memref<1x4x16x64xf32, #tpu.memory_space<vmem>>, vector<1x1x16x64xf32>
    %166 = vector.shape_cast %165 : vector<1x1x16x64xf32> to vector<16x64xf32>
    %167 = vector.shape_cast %164 : vector<16x64xf32> to vector<1x1x16x64xf32>
    tpu.vector_store %arg10[%c0_153, %c1_154, %c0_155, %c0_156], %167 {strides = array<i32>} : memref<1x4x16x64xf32, #tpu.memory_space<vmem>>, vector<1x1x16x64xf32>,
    %cst_157 = arith.constant 5.625000e-01 : f32
    %168 = vector.broadcast %cst_157 : f32 to vector<16x64xf32>
    %169 = arith.mulf %168, %135 : vector<16x64xf32>
    %170 = arith.addf %137, %138 : vector<16x64xf32>
    %cst_158 = arith.constant 1.875000e-01 : f32
    %171 = vector.broadcast %cst_158 : f32 to vector<16x64xf32>
    %172 = arith.mulf %171, %170 : vector<16x64xf32>
    %173 = arith.addf %169, %172 : vector<16x64xf32>
    %cst_159 = arith.constant 6.250000e-02 : f32
    %174 = vector.broadcast %cst_159 : f32 to vector<16x64xf32>
    %175 = arith.mulf %174, %142 : vector<16x64xf32>
    %176 = arith.addf %173, %175 : vector<16x64xf32>
    %c0_160 = arith.constant 0 : index
    %c2_161 = arith.constant 2 : index
    %c0_162 = arith.constant 0 : index
    %c0_163 = arith.constant 0 : index
    %177 = vector.load %arg10[%c0_160, %c2_161, %c0_162, %c0_163] : memref<1x4x16x64xf32, #tpu.memory_space<vmem>>, vector<1x1x16x64xf32>
    %178 = vector.shape_cast %177 : vector<1x1x16x64xf32> to vector<16x64xf32>
    %179 = vector.shape_cast %176 : vector<16x64xf32> to vector<1x1x16x64xf32>
    tpu.vector_store %arg10[%c0_160, %c2_161, %c0_162, %c0_163], %179 {strides = array<i32>} : memref<1x4x16x64xf32, #tpu.memory_space<vmem>>, vector<1x1x16x64xf32>,
    %cst_164 = arith.constant 5.625000e-01 : f32
    %180 = vector.broadcast %cst_164 : f32 to vector<16x64xf32>
    %181 = arith.mulf %180, %135 : vector<16x64xf32>
    %182 = arith.addf %137, %139 : vector<16x64xf32>
    %cst_165 = arith.constant 1.875000e-01 : f32
    %183 = vector.broadcast %cst_165 : f32 to vector<16x64xf32>
    %184 = arith.mulf %183, %182 : vector<16x64xf32>
    %185 = arith.addf %181, %184 : vector<16x64xf32>
    %cst_166 = arith.constant 6.250000e-02 : f32
    %186 = vector.broadcast %cst_166 : f32 to vector<16x64xf32>
    %187 = arith.mulf %186, %143 : vector<16x64xf32>
    %188 = arith.addf %185, %187 : vector<16x64xf32>
    %c0_167 = arith.constant 0 : index
    %c3_168 = arith.constant 3 : index
    %c0_169 = arith.constant 0 : index
    %c0_170 = arith.constant 0 : index
    %189 = vector.load %arg10[%c0_167, %c3_168, %c0_169, %c0_170] : memref<1x4x16x64xf32, #tpu.memory_space<vmem>>, vector<1x1x16x64xf32>
    %190 = vector.shape_cast %189 : vector<1x1x16x64xf32> to vector<16x64xf32>
    %191 = vector.shape_cast %188 : vector<16x64xf32> to vector<1x1x16x64xf32>
    tpu.vector_store %arg10[%c0_167, %c3_168, %c0_169, %c0_170], %191 {strides = array<i32>} : memref<1x4x16x64xf32, #tpu.memory_space<vmem>>, vector<1x1x16x64xf32>,
    return
  }
  func.func @transform_0(%arg0: i32) -> (i32, i32, i32) {
    %c0_i32 = arith.constant 0 : i32
    %c0_i32_0 = arith.constant 0 : i32
    %c0_i32_1 = arith.constant 0 : i32
    return %arg0, %c0_i32, %c0_i32_0 : i32, i32, i32
  }
  func.func @transform_1(%arg0: i32) -> (i32, i32, i32) {
    %c0_i32 = arith.constant 0 : i32
    %c0_i32_0 = arith.constant 0 : i32
    %c0_i32_1 = arith.constant 0 : i32
    return %arg0, %c0_i32, %c0_i32_0 : i32, i32, i32
  }
  func.func @transform_2(%arg0: i32) -> (i32, i32, i32) {
    %c0_i32 = arith.constant 0 : i32
    %c0_i32_0 = arith.constant 0 : i32
    %c0_i32_1 = arith.constant 0 : i32
    %c0_i32_2 = arith.constant 0 : i32
    return %c0_i32, %c0_i32_0, %c0_i32_1 : i32, i32, i32
  }
  func.func @transform_3(%arg0: i32) -> (i32, i32) {
    %c0_i32 = arith.constant 0 : i32
    %c0_i32_0 = arith.constant 0 : i32
    %c0_i32_1 = arith.constant 0 : i32
    return %c0_i32, %c0_i32_0 : i32, i32
  }
  func.func @transform_4(%arg0: i32) -> (i32, i32, i32) {
    %c0_i32 = arith.constant 0 : i32
    %c0_i32_0 = arith.constant 0 : i32
    %c0_i32_1 = arith.constant 0 : i32
    %c0_i32_2 = arith.constant 0 : i32
    return %c0_i32, %c0_i32_0, %c0_i32_1 : i32, i32, i32
  }
  func.func @transform_5(%arg0: i32) -> (i32, i32) {
    %c0_i32 = arith.constant 0 : i32
    %c0_i32_0 = arith.constant 0 : i32
    %c0_i32_1 = arith.constant 0 : i32
    return %c0_i32, %c0_i32_0 : i32, i32
  }
  func.func @transform_6(%arg0: i32) -> (i32, i32) {
    %c0_i32 = arith.constant 0 : i32
    %c0_i32_0 = arith.constant 0 : i32
    %c0_i32_1 = arith.constant 0 : i32
    return %c0_i32, %c0_i32_0 : i32, i32
  }
  func.func @transform_7(%arg0: i32) -> (i32, i32) {
    %c0_i32 = arith.constant 0 : i32
    %c0_i32_0 = arith.constant 0 : i32
    %c0_i32_1 = arith.constant 0 : i32
    return %c0_i32, %c0_i32_0 : i32, i32
  }
  func.func @transform_8(%arg0: i32) -> (i32, i32, i32, i32) {
    %c0_i32 = arith.constant 0 : i32
    %c0_i32_0 = arith.constant 0 : i32
    %c0_i32_1 = arith.constant 0 : i32
    %c0_i32_2 = arith.constant 0 : i32
    return %arg0, %c0_i32, %c0_i32_0, %c0_i32_1 : i32, i32, i32, i32
  }
  func.func @transform_9(%arg0: i32) -> (i32, i32, i32, i32) {
    %c0_i32 = arith.constant 0 : i32
    %c0_i32_0 = arith.constant 0 : i32
    %c0_i32_1 = arith.constant 0 : i32
    %c0_i32_2 = arith.constant 0 : i32
    return %arg0, %c0_i32, %c0_i32_0, %c0_i32_1 : i32, i32, i32, i32
  }
}

</mosaic_0001>

<bundles_post_ra>
// kernel: tile.14
= control target key start
LH: loop header
LB: loop body
LE: loop exit
PB: predicated region body
PF: predicated region fallthrough
CT: control target
= control target key end

     0   :  { %s28_s0 = inlined_call_operand.vmem [shape: f32[8], index: 0, kind: input, shape index: {}]   ;;  %s29_s1 = inlined_call_operand.vmem [shape: f32[16,8], index: 1, kind: output, shape index: {}]  }
   0x1   :  { %v4_v0 = vld [vmem:[%s28_s0] ss:$0 sm:$0xff] }
   0x2   :  { %5 = vst [vmem:[%s29_s1] sm:$0xff] %v4_v0  ;;  %8 = vst [vmem:[%s29_s1 + $0x8] sm:$0xff] %v4_v0 }

// kernel: tile.15
= control target key start
LH: loop header
LB: loop body
LE: loop exit
PB: predicated region body
PF: predicated region fallthrough
CT: control target
= control target key end

     0   :  { %s131_s10 = smov 120   ;;  %s132_s11 = smov 104   ;;  %vm3_vm0 = vcmask 64512   ;;  %vm9_vm1 = vcmask 1048512   ;;  %vm15_vm2 = vcmask 982912   ;;  %vm21_vm3 = vcmask 917312   ;;  %s207_s0 = inlined_call_operand.vmem [shape: f32[16,8], index: 0, kind: input, shape index: {}]   ;;  %s208_s1 = inlined_call_operand.vmem [shape: f32[1,128], index: 1, kind: output, shape index: {}]  }
   0x1   :  { %v101_v0 = vld [vmem:[%s207_s0 + $0xf] sm:$0x1]   ;;  %v103_v1 = vld [vmem:[%s207_s0 + $0xd] sm:$0x1]   ;;  %v102_v2 = vld [vmem:[%s207_s0 + $0xe] sm:$0x1]  }
   0x2   :  { %7 = vrot.lane.b32.xlu0 %v101_v0, %s131_s10  ;;  %19 = vrot.lane.b32.xlu1 %v103_v1, %s132_s11  ;;  %v104_v3 = vld [vmem:[%s207_s0 + $0xc] sm:$0x1]   ;;  %s133_s16 = smov 112   ;;  %s134_s17 = smov 96   ;;  %v105_v4 = vld [vmem:[%s207_s0 + $0xb] sm:$0x1]  }
   0x3   :  { %v106_v5 = vld [vmem:[%s207_s0 + $0xa] sm:$0x1]   ;;  %v2_v6 = vld [vmem:[%s207_s0] sm:$0x1]   ;;  %s135_s24 = smov 88   ;;  %s136_s25 = smov 80  }
   0x4   :  { %4 = vst.msk [vmem:[#allocation0] sm:$0x1] %vm3_vm0, %v2_v6   ;;  %v107_v7 = vld [vmem:[%s207_s0 + $0x9] sm:$0x1]   ;;  %v108_v8 = vld [vmem:[%s207_s0 + $0x8] sm:$0x1]  }
   0x5   :  { %s137_s30 = smov 72   ;;  %s138_s2 = smov 64   ;;  %v109_v9 = vld [vmem:[%s207_s0 + $0x7] sm:$0x1]   ;;  %v110_v10 = vld [vmem:[%s207_s0 + $0x6] sm:$0x1]  }
   0x6   :  { %13 = vrot.lane.b32.xlu0 %v102_v2, %s133_s16  ;;  %25 = vrot.lane.b32.xlu1 %v104_v3, %s134_s17  ;;  %s139_s7 = smov 56   ;;  %s140_s8 = smov 48   ;;  %v111_v11 = vld [vmem:[%s207_s0 + $0x5] sm:$0x1]   ;;  %v112_v12 = vld [vmem:[%s207_s0 + $0x4] sm:$0x1]  }
   0x7   :  { %s141_s13 = smov 40   ;;  %s142_s14 = smov 32   ;;  %v113_v13 = vld [vmem:[%s207_s0 + $0x3] sm:$0x1]   ;;  %v114_v14 = vld [vmem:[%s207_s0 + $0x2] sm:$0x1]  }
   0x8   :  { %s143_s19 = smov 24   ;;  %s144_s20 = smov 16   ;;  %v115_v15 = vld [vmem:[%s207_s0 + $0x1] sm:$0x1]   ;;  %vm27_vm4 = vcmask 851712   ;;  %vm33_vm5 = vcmask 786112  }
   0x9   :  { %s145_s0 = smov 8   ;;  %vm39_vm6 = vcmask 720512   ;;  %vm45_vm7 = vcmask 654912   ;;  %vm51_vm8 = vcmask 589312   ;;  %vm57_vm9 = vcmask 523712  }
   0xa   :  { %31 = vrot.lane.b32.xlu0 %v105_v4, %s135_s24  ;;  %37 = vrot.lane.b32.xlu1 %v106_v5, %s136_s25  ;;  %vm63_vm10 = vcmask 458112   ;;  %vm69_vm11 = vcmask 392512   ;;  %vm75_vm12 = vcmask 326912   ;;  %vm81_vm13 = vcmask 261312  }
   0xb   :  { %vm87_vm14 = vcmask 195712   ;;  %vm93_vm15 = vcmask 130112  }
   0xe   :  { %43 = vrot.lane.b32.xlu0 %v107_v7, %s137_s30  ;;  %49 = vrot.lane.b32.xlu1 %v108_v8, %s138_s2 }
  0x12   :  { %55 = vrot.lane.b32.xlu0 %v109_v9, %s139_s7  ;;  %61 = vrot.lane.b32.xlu1 %v110_v10, %s140_s8 }
  0x16   :  { %67 = vrot.lane.b32.xlu0 %v111_v11, %s141_s13  ;;  %73 = vrot.lane.b32.xlu1 %v112_v12, %s142_s14 }
  0x1a   :  { %79 = vrot.lane.b32.xlu0 %v113_v13, %s143_s19  ;;  %85 = vrot.lane.b32.xlu1 %v114_v14, %s144_s20 }
  0x1e   :  { %91 = vrot.lane.b32.xlu0 %v115_v15, %s145_s0 }
  0x74   :  { %v8_v16 = vpop.permute.xlu0 %7   ;;  %v20_v17 = vpop.permute.xlu1 %19  }
  0x75   :  { %10 = vst.msk [vmem:[#allocation0] sm:$0x1] %vm9_vm1, %v8_v16  }
  0x78   :  { %v14_v18 = vpop.permute.xlu0 %13   ;;  %v26_v19 = vpop.permute.xlu1 %25  }
  0x79   :  { %16 = vst.msk [vmem:[#allocation0] sm:$0x1] %vm15_vm2, %v14_v18  }
  0x7a   :  { %22 = vst.msk [vmem:[#allocation0] sm:$0x1] %vm21_vm3, %v20_v17  }
  0x7b   :  { %28 = vst.msk [vmem:[#allocation0] sm:$0x1] %vm27_vm4, %v26_v19  }
  0x7c   :  { %v32_v20 = vpop.permute.xlu0 %31   ;;  %v38_v21 = vpop.permute.xlu1 %37  }
  0x7d   :  { %34 = vst.msk [vmem:[#allocation0] sm:$0x1] %vm33_vm5, %v32_v20  }
  0x7e   :  { %40 = vst.msk [vmem:[#allocation0] sm:$0x1] %vm39_vm6, %v38_v21  }
  0x80   :  { %v44_v22 = vpop.permute.xlu0 %43   ;;  %v50_v23 = vpop.permute.xlu1 %49  }
  0x81   :  { %46 = vst.msk [vmem:[#allocation0] sm:$0x1] %vm45_vm7, %v44_v22  }
  0x82   :  { %52 = vst.msk [vmem:[#allocation0] sm:$0x1] %vm51_vm8, %v50_v23  }
  0x84   :  { %v56_v24 = vpop.permute.xlu0 %55   ;;  %v62_v25 = vpop.permute.xlu1 %61  }
  0x85   :  { %58 = vst.msk [vmem:[#allocation0] sm:$0x1] %vm57_vm9, %v56_v24  }
  0x86   :  { %64 = vst.msk [vmem:[#allocation0] sm:$0x1] %vm63_vm10, %v62_v25  }
  0x88   :  { %v68_v26 = vpop.permute.xlu0 %67   ;;  %v74_v27 = vpop.permute.xlu1 %73  }
  0x89   :  { %70 = vst.msk [vmem:[#allocation0] sm:$0x1] %vm69_vm11, %v68_v26  }
  0x8a   :  { %76 = vst.msk [vmem:[#allocation0] sm:$0x1] %vm75_vm12, %v74_v27  }
  0x8c   :  { %v80_v28 = vpop.permute.xlu0 %79   ;;  %v86_v29 = vpop.permute.xlu1 %85  }
  0x8d   :  { %82 = vst.msk [vmem:[#allocation0] sm:$0x1] %vm81_vm13, %v80_v28  }
  0x8e   :  { %88 = vst.msk [vmem:[#allocation0] sm:$0x1] %vm87_vm14, %v86_v29  }
  0x90   :  { %v92_v30 = vpop.permute.xlu0 %91  }
  0x91   :  { %94 = vst.msk [vmem:[#allocation0] sm:$0x1] %vm93_vm15, %v92_v30  }
  0x98   :  { %v98_v31 = vld [vmem:[#allocation0] sm:$0x1] }
  0x99   :  { %100 = vst [vmem:[%s208_s1] sm:$0x1] %v98_v31 }

// kernel: tile.22
= control target key start
LH: loop header
LB: loop body
LE: loop exit
PB: predicated region body
PF: predicated region fallthrough
CT: control target
= control target key end

     0   :  { %s28_s0 = inlined_call_operand.vmem [shape: f32[4], index: 0, kind: input, shape index: {}]   ;;  %s29_s1 = inlined_call_operand.vmem [shape: f32[16,4], index: 1, kind: output, shape index: {}]  }
   0x1   :  { %v4_v0 = vld [vmem:[%s28_s0] ss:$0 sm:$0xff] }
   0x2   :  { %5 = vst [vmem:[%s29_s1] sm:$0xff] %v4_v0  ;;  %8 = vst [vmem:[%s29_s1 + $0x8] sm:$0xff] %v4_v0 }

// kernel: tile.23
= control target key start
LH: loop header
LB: loop body
LE: loop exit
PB: predicated region body
PF: predicated region fallthrough
CT: control target
= control target key end

     0   :  { %s131_s10 = smov 60   ;;  %s132_s11 = smov 52   ;;  %vm3_vm0 = vcmask 31744   ;;  %vm9_vm1 = vcmask 523744   ;;  %vm15_vm2 = vcmask 490944   ;;  %vm21_vm3 = vcmask 458144   ;;  %s207_s0 = inlined_call_operand.vmem [shape: f32[16,4], index: 0, kind: input, shape index: {}]   ;;  %s208_s1 = inlined_call_operand.vmem [shape: f32[1,64], index: 1, kind: output, shape index: {}]  }
   0x1   :  { %v101_v0 = vld [vmem:[%s207_s0 + $0xf] sm:$0x1]   ;;  %v103_v1 = vld [vmem:[%s207_s0 + $0xd] sm:$0x1]   ;;  %v102_v2 = vld [vmem:[%s207_s0 + $0xe] sm:$0x1]  }
   0x2   :  { %7 = vrot.lane.b32.xlu0 %v101_v0, %s131_s10  ;;  %19 = vrot.lane.b32.xlu1 %v103_v1, %s132_s11  ;;  %v104_v3 = vld [vmem:[%s207_s0 + $0xc] sm:$0x1]   ;;  %s133_s16 = smov 56   ;;  %s134_s17 = smov 48   ;;  %v105_v4 = vld [vmem:[%s207_s0 + $0xb] sm:$0x1]  }
   0x3   :  { %v106_v5 = vld [vmem:[%s207_s0 + $0xa] sm:$0x1]   ;;  %v2_v6 = vld [vmem:[%s207_s0] sm:$0x1]   ;;  %s135_s24 = smov 44   ;;  %s136_s25 = smov 40  }
   0x4   :  { %4 = vst.msk [vmem:[#allocation0] sm:$0x1] %vm3_vm0, %v2_v6   ;;  %v107_v7 = vld [vmem:[%s207_s0 + $0x9] sm:$0x1]   ;;  %v108_v8 = vld [vmem:[%s207_s0 + $0x8] sm:$0x1]  }
   0x5   :  { %s137_s30 = smov 36   ;;  %s138_s2 = smov 32   ;;  %v109_v9 = vld [vmem:[%s207_s0 + $0x7] sm:$0x1]   ;;  %v110_v10 = vld [vmem:[%s207_s0 + $0x6] sm:$0x1]  }
   0x6   :  { %13 = vrot.lane.b32.xlu0 %v102_v2, %s133_s16  ;;  %25 = vrot.lane.b32.xlu1 %v104_v3, %s134_s17  ;;  %s139_s7 = smov 28   ;;  %s140_s8 = smov 24   ;;  %v111_v11 = vld [vmem:[%s207_s0 + $0x5] sm:$0x1]   ;;  %v112_v12 = vld [vmem:[%s207_s0 + $0x4] sm:$0x1]  }
   0x7   :  { %s141_s13 = smov 20   ;;  %s142_s14 = smov 16   ;;  %v113_v13 = vld [vmem:[%s207_s0 + $0x3] sm:$0x1]   ;;  %v114_v14 = vld [vmem:[%s207_s0 + $0x2] sm:$0x1]  }
   0x8   :  { %s143_s19 = smov 12   ;;  %s144_s20 = smov 8   ;;  %v115_v15 = vld [vmem:[%s207_s0 + $0x1] sm:$0x1]   ;;  %vm27_vm4 = vcmask 425344   ;;  %vm33_vm5 = vcmask 392544  }
   0x9   :  { %s145_s0 = smov 4   ;;  %vm39_vm6 = vcmask 359744   ;;  %vm45_vm7 = vcmask 326944   ;;  %vm51_vm8 = vcmask 294144   ;;  %vm57_vm9 = vcmask 261344  }
   0xa   :  { %31 = vrot.lane.b32.xlu0 %v105_v4, %s135_s24  ;;  %37 = vrot.lane.b32.xlu1 %v106_v5, %s136_s25  ;;  %vm63_vm10 = vcmask 228544   ;;  %vm69_vm11 = vcmask 195744   ;;  %vm75_vm12 = vcmask 162944   ;;  %vm81_vm13 = vcmask 130144  }
   0xb   :  { %vm87_vm14 = vcmask 97344   ;;  %vm93_vm15 = vcmask 64544  }
   0xe   :  { %43 = vrot.lane.b32.xlu0 %v107_v7, %s137_s30  ;;  %49 = vrot.lane.b32.xlu1 %v108_v8, %s138_s2 }
  0x12   :  { %55 = vrot.lane.b32.xlu0 %v109_v9, %s139_s7  ;;  %61 = vrot.lane.b32.xlu1 %v110_v10, %s140_s8 }
  0x16   :  { %67 = vrot.lane.b32.xlu0 %v111_v11, %s141_s13  ;;  %73 = vrot.lane.b32.xlu1 %v112_v12, %s142_s14 }
  0x1a   :  { %79 = vrot.lane.b32.xlu0 %v113_v13, %s143_s19  ;;  %85 = vrot.lane.b32.xlu1 %v114_v14, %s144_s20 }
  0x1e   :  { %91 = vrot.lane.b32.xlu0 %v115_v15, %s145_s0 }
  0x74   :  { %v8_v16 = vpop.permute.xlu0 %7   ;;  %v20_v17 = vpop.permute.xlu1 %19  }
  0x75   :  { %10 = vst.msk [vmem:[#allocation0] sm:$0x1] %vm9_vm1, %v8_v16  }
  0x78   :  { %v14_v18 = vpop.permute.xlu0 %13   ;;  %v26_v19 = vpop.permute.xlu1 %25  }
  0x79   :  { %16 = vst.msk [vmem:[#allocation0] sm:$0x1] %vm15_vm2, %v14_v18  }
  0x7a   :  { %22 = vst.msk [vmem:[#allocation0] sm:$0x1] %vm21_vm3, %v20_v17  }
  0x7b   :  { %28 = vst.msk [vmem:[#allocation0] sm:$0x1] %vm27_vm4, %v26_v19  }
  0x7c   :  { %v32_v20 = vpop.permute.xlu0 %31   ;;  %v38_v21 = vpop.permute.xlu1 %37  }
  0x7d   :  { %34 = vst.msk [vmem:[#allocation0] sm:$0x1] %vm33_vm5, %v32_v20  }
  0x7e   :  { %40 = vst.msk [vmem:[#allocation0] sm:$0x1] %vm39_vm6, %v38_v21  }
  0x80   :  { %v44_v22 = vpop.permute.xlu0 %43   ;;  %v50_v23 = vpop.permute.xlu1 %49  }
  0x81   :  { %46 = vst.msk [vmem:[#allocation0] sm:$0x1] %vm45_vm7, %v44_v22  }
  0x82   :  { %52 = vst.msk [vmem:[#allocation0] sm:$0x1] %vm51_vm8, %v50_v23  }
  0x84   :  { %v56_v24 = vpop.permute.xlu0 %55   ;;  %v62_v25 = vpop.permute.xlu1 %61  }
  0x85   :  { %58 = vst.msk [vmem:[#allocation0] sm:$0x1] %vm57_vm9, %v56_v24  }
  0x86   :  { %64 = vst.msk [vmem:[#allocation0] sm:$0x1] %vm63_vm10, %v62_v25  }
  0x88   :  { %v68_v26 = vpop.permute.xlu0 %67   ;;  %v74_v27 = vpop.permute.xlu1 %73  }
  0x89   :  { %70 = vst.msk [vmem:[#allocation0] sm:$0x1] %vm69_vm11, %v68_v26  }
  0x8a   :  { %76 = vst.msk [vmem:[#allocation0] sm:$0x1] %vm75_vm12, %v74_v27  }
  0x8c   :  { %v80_v28 = vpop.permute.xlu0 %79   ;;  %v86_v29 = vpop.permute.xlu1 %85  }
  0x8d   :  { %82 = vst.msk [vmem:[#allocation0] sm:$0x1] %vm81_vm13, %v80_v28  }
  0x8e   :  { %88 = vst.msk [vmem:[#allocation0] sm:$0x1] %vm87_vm14, %v86_v29  }
  0x90   :  { %v92_v30 = vpop.permute.xlu0 %91  }
  0x91   :  { %94 = vst.msk [vmem:[#allocation0] sm:$0x1] %vm93_vm15, %v92_v30  }
  0x98   :  { %v98_v31 = vld [vmem:[#allocation0] sm:$0x1] }
  0x99   :  { %100 = vst [vmem:[%s208_s1] sm:$0x1] %v98_v31 }

// kernel: diff_decoder_forward.1
= control target key start
LH: loop header
LB: loop body
LE: loop exit
PB: predicated region body
PF: predicated region fallthrough
CT: control target
= control target key end

     0   :  { %s2498_s30 = smov 0   ;;  %s3282_s0 = inlined_call_operand.vmem [shape: f32[2,16,64], index: 0, kind: input, shape index: {}]   ;;  %s3283_s1 = inlined_call_operand.vmem [shape: f32[2,16,64], index: 1, kind: input, shape index: {}]   ;;  %s3284_s2 = inlined_call_operand.vmem [shape: f32[3,72,128], index: 2, kind: input, shape index: {}]   ;;  %s3285_s3 = inlined_call_operand.vmem [shape: f32[1,128], index: 3, kind: input, shape index: {}]   ;;  %s3286_s4 = inlined_call_operand.vmem [shape: f32[3,144,128], index: 4, kind: input, shape index: {}]   ;;  %s3287_s5 = inlined_call_operand.vmem [shape: f32[1,128], index: 5, kind: input, shape index: {}]   ;;  %s3288_s6 = inlined_call_operand.vmem [shape: f32[128,64], index: 6, kind: input, shape index: {}]   ;;  %s3289_s7 = inlined_call_operand.vmem [shape: f32[1,64], index: 7, kind: input, shape index: {}]   ;;  %s3290_s8 = inlined_call_operand.vmem [shape: f32[2,4,16,128], index: 8, kind: output, shape index: {0}]   ;;  %s3291_s9 = inlined_call_operand.vmem [shape: f32[2,4,16,64], index: 9, kind: output, shape index: {1}]  }
   0x1 LB: > { %s1993_s10 = sadd.s32 4294967295, %s2440_s30   ;;  %p1997_p0 = scmp.ge.s32.totalorder %s2440_s30, 1  ;;  %s2440_s30 = sphi %s2498_s30, %s20_s30  }
   0x2   : > { %p300_p1 = scmp.lt.s32.totalorder %s2440_s30, 3 }
   0x4   : > { %p301_p2 = pnand %p1997_p0, %p300_p1 }
   0x5   : > { %p346_p3 = scmp.lt.s32.totalorder (!%p301_p2), %s1993_s10, 1  ;;  %v2008_v0 = vld [vmem:[%s3284_s2 + $0x48] sm:$0xff] (!%p301_p2)  ;;  %v2009_v1 = vld [vmem:[%s3284_s2 + $0x50] sm:$0xff] (!%p301_p2)  ;;  %v2010_v2 = vld [vmem:[%s3284_s2 + $0x58] sm:$0xff] (!%p301_p2)  ;;  %vm366_vm0 = vcmask (!%p301_p2), 588800   ;;  %v2442_v6 = vmov (!%p301_p2), 0.0  }
   0x6   : > { %304 = sbr.rel (%p301_p2) target bundleno = 1812 (0x714), region = 52  ;;  %v2247_v3 = vpack.c.bf16 (!%p301_p2), %v2009_v1, %v2008_v0  ;;  %v2011_v4 = vld [vmem:[%s3284_s2 + $0x60] sm:$0xff] (!%p301_p2)  ;;  %367 = vst.msk [vmem:[#allocation2] sm:$0xff] (!%p301_p2), %vm366_vm0, %v2442_v6  ;;  %368 = vst.msk [vmem:[#allocation2 + $0x8] sm:$0xff] (!%p301_p2), %vm366_vm0, %v2442_v6  ;;  %v2012_v15 = vld [vmem:[%s3284_s2 + $0x68] sm:$0xff] (!%p301_p2)  ;;  %vm369_vm1 = vcmask (!%p301_p2), 582656  }
   0x7   : > { %v2251_v5 = vpack.c.bf16 (!%p301_p2), %v2011_v4, %v2010_v2  ;;  %371 = vst [vmem:[#allocation3] sm:$0xff] (!%p301_p2), %v2442_v6  ;;  %374 = vst [vmem:[#allocation3 + $0x10] sm:$0xff] (!%p301_p2), %v2442_v6  ;;  %v2013_v16 = vld [vmem:[%s3284_s2 + $0x70] sm:$0xff] (!%p301_p2)  ;;  %v2014_v18 = vld [vmem:[%s3284_s2 + $0x78] sm:$0xff] (!%p301_p2)  ;;  %vm407_vm2 = vcmask (!%p301_p2), 556064   ;;  %vm377_vm3 = vcmask (!%p301_p2), 123904  }
   0x8   : > { %376 = vst [vmem:[#allocation3 + $0x20] sm:$0x3] (!%p301_p2), %v2442_v6  ;;  %2248 = vmatprep.subr.bf16.mxu0 (!%p301_p2), %v2247_v3  ;;  %v2255_v17 = vpack.c.bf16 (!%p301_p2), %v2013_v16, %v2012_v15  ;;  %370 = vst.msk [vmem:[#allocation2 + $0x10] sm:$0x3] (!%p301_p2), %vm369_vm1, %v2442_v6  ;;  %v2015_v19 = vld [vmem:[%s3284_s2 + $0x80] sm:$0xff] (!%p301_p2)  ;;  %v2016_v24 = vld [vmem:[%s3284_s2 + $0x88] sm:$0xff] (!%p301_p2) }
   0x9   : > { %2250 = vmatpush3.bf16.msra.mxu0 (!%p301_p2), %v2247_v3  ;;  %v2259_v20 = vpack.c.bf16 (!%p301_p2), %v2015_v19, %v2014_v18  ;;  %v412_v25 = vld [vmem:[%s3284_s2] sm:$0xff] (!%p301_p2)  ;;  %v413_v26 = vld [vmem:[%s3284_s2 + $0x8] sm:$0xff] (!%p301_p2)  ;;  %v414_v36 = vld [vmem:[%s3284_s2 + $0x10] sm:$0xff] (!%p301_p2)  ;;  %v2444_v3 = vmov (!%p301_p2), 0.0|0.0   ;;  %378 = vst.msk [vmem:[#allocation3 + $0x28] sm:$0x3] (!%p301_p2), %vm377_vm3, %v2442_v6 }
   0xa   : > { %2252 = vmatprep.subr.bf16.mxu0 (!%p301_p2), %v2251_v5  ;;  %v2263_v29 = vpack.c.bf16 (!%p301_p2), %v413_v26, %v412_v25  ;;  %v415_v37 = vld [vmem:[%s3284_s2 + $0x18] sm:$0xff] (!%p301_p2)  ;;  %v416_v40 = vld [vmem:[%s3284_s2 + $0x20] sm:$0xff] (!%p301_p2)  ;;  %v417_v41 = vld [vmem:[%s3284_s2 + $0x28] sm:$0xff] (!%p301_p2)  ;;  %2295 = vmatprep.subr.bf16.mxu1 (!%p301_p2), %v2444_v3  ;;  %vm372_vm4 = vcmask (!%p301_p2), 130048   ;;  %vm703_vm5 = vcmask (!%p301_p2), 1040384   ;;  %s2445_s20 = smov (!%p301_p2), 8  }
   0xb   : > { %v2267_v38 = vpack.c.bf16 (!%p301_p2), %v415_v37, %v414_v36  ;;  %v2271_v43 = vpack.c.bf16 (!%p301_p2), %v417_v41, %v416_v40  ;;  %v418_v44 = vld [vmem:[%s3284_s2 + $0x30] sm:$0xff] (!%p301_p2)  ;;  %v419_v45 = vld [vmem:[%s3284_s2 + $0x38] sm:$0xff] (!%p301_p2)  ;;  %v420_v47 = vld [vmem:[%s3284_s2 + $0x40] sm:$0xff] (!%p301_p2)  ;;  %373 = vst.msk [vmem:[#allocation3 + $0x8] sm:$0xff] (!%p301_p2), %vm372_vm4, %v2442_v6  ;;  %vm724_vm6 = vcmask (!%p301_p2), 1040448   ;;  %vm726_vm7 = vcmask (!%p301_p2), 57344  }
   0xc   : > { %v2275_v46 = vpack.c.bf16 (!%p301_p2), %v419_v45, %v418_v44  ;;  %v2021_v48 = vld [vmem:[%s3284_s2 + $0x90] sm:$0xff] (!%p301_p2)  ;;  %v2022_v49 = vld [vmem:[%s3284_s2 + $0x98] sm:$0xff] (!%p301_p2)  ;;  %v2023_v50 = vld [vmem:[%s3284_s2 + $0xa0] sm:$0xff] (!%p301_p2)  ;;  %375 = vst.msk [vmem:[#allocation3 + $0x18] sm:$0xff] (!%p301_p2), %vm372_vm4, %v2442_v6  ;;  %vm716_vm8 = vcmask (!%p301_p2), 1047617   ;;  %vm718_vm9 = vcmask (!%p301_p2), 64513  }
   0xd   : > { %s3293_s10 = smov (!%p346_p3, %s1993_s10), 1  ;;  %2254 = vmatpush3.bf16.msra.mxu0 %v2251_v5  ;;  %v2024_v51 = vld [vmem:[%s3284_s2 + $0xa8] sm:$0xff]  ;;  %v2279_v52 = vpack.c.bf16 %v2022_v49, %v2021_v48  ;;  %v2025_v55 = vld [vmem:[%s3284_s2 + $0xb0] sm:$0xff]  ;;  %v2026_v56 = vld [vmem:[%s3284_s2 + $0xb8] sm:$0xff]  ;;  %vm720_vm10 = vcmask 1047616   ;;  %vm722_vm11 = vcmask 64512  }
   0xe   : > { %s2094_s19 = sshll.u32 %s3293_s10, 4  ;;  %2256 = vmatprep.subr.bf16.mxu0 %v2255_v17  ;;  %v2283_v53 = vpack.c.bf16 %v2024_v51, %v2023_v50  ;;  %v2287_v58 = vpack.c.bf16 %v2026_v56, %v2025_v55  ;;  %v2027_v59 = vld [vmem:[%s3284_s2 + $0xc0] sm:$0xff]  ;;  %v2028_v60 = vld [vmem:[%s3284_s2 + $0xc8] sm:$0xff]  ;;  %v2029_v62 = vld [vmem:[%s3284_s2 + $0xd0] sm:$0xff]  ;;  %vm779_vm12 = vcmask 1046528   ;;  %vm978_vm13 = vcmask 1045504  }
   0xf   : > { %s355_s22 = scalar_lea.vmem %s3283_s1, %s2094_s19  ;;  %s350_s14 = scalar_lea.vmem %s3282_s0, %s2094_s19  ;;  %v2291_v61 = vpack.c.bf16 %v2028_v60, %v2027_v59  ;;  %v2033_v0 = vld [vmem:[%s3286_s4 + $0x90] sm:$0xff]  ;;  %v2034_v1 = vld [vmem:[%s3286_s4 + $0x98] sm:$0xff]  ;;  %v2055_v2 = vld [vmem:[%s3286_s4 + $0x120] sm:$0xff]  ;;  %vm1721_vm14 = vcmask 556071   ;;  %vm1719_vm15 = vcmask 548896   ;;  %vm1741_vm1 = vcmask 25600  }
  0x10   : > { %v381_v7 = vld [vmem:[%s355_s22] sm:$0xff]  ;;  %v382_v8 = vld [vmem:[%s355_s22 + $0x8] sm:$0xff]  ;;  %s2443_s19 = smov 4   ;;  %v2296_v4 = vpack.c.bf16 %v2034_v1, %v2033_v0  ;;  %v2038_v15 = vld [vmem:[%s3286_s4 + $0xb8] sm:$0xff]  ;;  %s2446_s25 = smov 124   ;;  %vm1242_vm3 = vcmask 130112  }
  0x11   : > { %v2006_v9 = vmul.f32 -1.442695, %v381_v7  ;;  %v2007_v10 = vmul.f32 -1.442695, %v382_v8  ;;  %2258 = vmatpush3.bf16.msra.mxu0 %v2255_v17  ;;  %v379_v21 = vld [vmem:[%s350_s14] sm:$0xff]  ;;  %v380_v22 = vld [vmem:[%s350_s14 + $0x8] sm:$0xff] }
  0x12   : > { %2260 = vmatprep.subr.bf16.mxu0 %v2259_v20  ;;  %v2056_v5 = vld [vmem:[%s3286_s4 + $0x128] sm:$0xff]  ;;  %v2035_v7 = vld [vmem:[%s3286_s4 + $0xa0] sm:$0xff]  ;;  %2297 = vmatpush1.bf16.msra.mxu1 %v2296_v4  ;;  %v2041_v26 = vld [vmem:[%s3286_s4 + $0xd0] sm:$0xff]  ;;  %s2447_s26 = smov 120   ;;  %s2096_s27 = sshll.u32 %s3293_s10, 6 }
  0x13   : > { %2426 = vpow2.f32 %v2006_v9  ;;  %v2036_v8 = vld [vmem:[%s3286_s4 + $0xa8] sm:$0xff]  ;;  %v2350_v9 = vpack.c.bf16 %v2056_v5, %v2055_v2  ;;  %2298 = vmatprep.subr.bf16.mxu1 %v2444_v3  ;;  %v2059_v16 = vld [vmem:[%s3286_s4 + $0x140] sm:$0xff]  ;;  %v2066_v36 = vld [vmem:[%s3286_s4 + $0x178] sm:$0xff]  ;;  %s3083_s11 = scalar_lea.vmem %s3290_s8, %s2096_s27  ;;  %s365_s12 = scalar_lea.vmem %s3291_s9, %s2096_s27 }
  0x14   : > { %2428 = vpow2.f32 %v2007_v10  ;;  %v2057_v10 = vld [vmem:[%s3286_s4 + $0x130] sm:$0xff]  ;;  %v2060_v17 = vld [vmem:[%s3286_s4 + $0x148] sm:$0xff]  ;;  %v2067_v6 = vld [vmem:[%s3286_s4 + $0x180] sm:$0xff] }
  0x15   : > { %2262 = vmatpush3.bf16.msra.mxu0 %v2259_v20  ;;  %v2356_v19 = vpack.c.bf16 %v2060_v17, %v2059_v16  ;;  %v2039_v20 = vld [vmem:[%s3286_s4 + $0xc0] sm:$0xff]  ;;  %v2068_v41 = vld [vmem:[%s3286_s4 + $0x188] sm:$0xff]  ;;  %v2070_v49 = vld [vmem:[%s3286_s4 + $0x198] sm:$0xff] }
  0x16   : > { %2165 = vmatprep.subr.mxu0 %v2016_v24  ;;  %v2047_v44 = vld [vmem:[%s3286_s4 + $0x100] sm:$0xff]  ;;  %v2048_v45 = vld [vmem:[%s3286_s4 + $0x108] sm:$0xff]  ;;  %v2049_v50 = vld [vmem:[%s3286_s4 + $0x110] sm:$0xff] }
  0x17   : > { %v2317_v48 = vpack.c.bf16 %v2048_v45, %v2047_v44  ;;  %v2050_v51 = vld [vmem:[%s3286_s4 + $0x118] sm:$0xff]  ;;  %v2071_v55 = vld [vmem:[%s3286_s4 + $0x1a0] sm:$0xff]  ;;  %v2072_v56 = vld [vmem:[%s3286_s4 + $0x1a8] sm:$0xff] }
  0x18   : > { %v2320_v59 = vpack.c.bf16 %v2050_v51, %v2049_v50  ;;  %v738_v45 = vld [vmem:[%s3286_s4 + $0x30] sm:$0xff] }
  0x19   : > { %2166 = vmatpush3.msra.mxu0 %v2016_v24  ;;  %v742_v51 = vld [vmem:[%s3286_s4 + $0x50] sm:$0xff] }
  0x1a   : > { %2264 = vmatprep.subr.bf16.mxu0 %v2263_v29 }
  0x1d   : > { %v2427_v11 = vpop.eup %2426 }
  0x1e   : > { %v2429_v12 = vpop.eup %2428  ;;  %v389_v13 = vadd.f32 1.0, %v2427_v11  ;;  %v2058_v11 = vld [vmem:[%s3286_s4 + $0x138] sm:$0xff] }
  0x1f   : > { %v390_v14 = vadd.f32 1.0, %v2429_v12  ;;  %v2299_v12 = vpack.c.bf16 %v2036_v8, %v2035_v7 }
  0x20   : > { %2430 = vrcp.f32 %v389_v13  ;;  %v2353_v13 = vpack.c.bf16 %v2058_v11, %v2057_v10  ;;  %v732_v10 = vld [vmem:[%s3286_s4] sm:$0xff]  ;;  %v733_v11 = vld [vmem:[%s3286_s4 + $0x8] sm:$0xff] }
  0x21   : > { %2432 = vrcp.f32 %v390_v14  ;;  %v2037_v14 = vld [vmem:[%s3286_s4 + $0xb0] sm:$0xff]  ;;  %2300 = vmatpush1.bf16.msra.mxu1 %v2299_v12 }
  0x22   : > { %v2302_v18 = vpack.c.bf16 %v2038_v15, %v2037_v14  ;;  %2301 = vmatprep.subr.bf16.mxu1 %v2444_v3 }
  0x25   : > { %2303 = vmatpush1.bf16.msra.mxu1 %v2302_v18 }
  0x26   : > { %2304 = vmatprep.subr.bf16.mxu1 %v2444_v3 }
  0x2a   : > { %v2431_v23 = vpop.eup %2430 }
  0x2b   : > { %v2433_v27 = vpop.eup %2432  ;;  %v395_v28 = vmul.f32 %v2431_v23, %v379_v21  ;;  %v2062_v23 = vld [vmem:[%s3286_s4 + $0x158] sm:$0xff] }
  0x2c   : > { %v396_v30 = vmul.f32 %v2433_v27, %v380_v22  ;;  %v2042_v27 = vld [vmem:[%s3286_s4 + $0xd8] sm:$0xff] }
  0x2d   : > { %v397_v31 = vadd.f32 %v395_v28, %v379_v21  ;;  %v2040_v21 = vld [vmem:[%s3286_s4 + $0xc8] sm:$0xff]  ;;  %v2063_v28 = vld [vmem:[%s3286_s4 + $0x160] sm:$0xff] }
  0x2e   : > { %v398_v32 = vadd.f32 %v396_v30, %v380_v22  ;;  %v2061_v22 = vld [vmem:[%s3286_s4 + $0x150] sm:$0xff]  ;;  %v2305_v24 = vpack.c.bf16 %v2040_v21, %v2039_v20  ;;  %v2308_v30 = vpack.c.bf16 %v2042_v27, %v2041_v26 }
  0x2f   : > { %401 = vrot.lane.b32.xlu0 %v397_v31, %s2443_s19  ;;  %v2359_v25 = vpack.c.bf16 %v2062_v23, %v2061_v22  ;;  %v734_v26 = vld [vmem:[%s3286_s4 + $0x10] sm:$0xff] }
  0x30   : > { %2306 = vmatpush1.bf16.msra.mxu1 %v2305_v24  ;;  %v2323_v24 = vpack.c.bf16 %v733_v11, %v732_v10  ;;  %v1089_v10 = vld [vmem:[%s3288_s6 + $0x30] sm:$0xff]  ;;  %v1090_v11 = vld [vmem:[%s3288_s6 + $0x38] sm:$0xff] }
  0x31   : > { %2307 = vmatprep.subr.bf16.mxu1 %v2444_v3 }
  0x33   : > { %403 = vrot.lane.b32.xlu0 %v398_v32, %s2443_s19  ;;  %v2043_v32 = vld [vmem:[%s3286_s4 + $0xe0] sm:$0xff] }
  0x34   : > { %2309 = vmatpush1.bf16.msra.mxu1 %v2308_v30 }
  0x35   : > { %2310 = vmatprep.subr.bf16.mxu1 %v2444_v3 }
  0xa1   : > { %v402_v33 = vpop.permute.xlu0 %401 }
  0xa2   : > { %408 = vst.msk [vmem:[#allocation2 + $0x1] sm:$0xff] %vm407_vm2, %v402_v33  ;;  %v2044_v33 = vld [vmem:[%s3286_s4 + $0xe8] sm:$0xff] }
  0xa5   : > { %v404_v34 = vpop.permute.xlu0 %403 }
  0xa6   : > { %409 = vst.msk [vmem:[#allocation2 + $0x9] sm:$0xff] %vm407_vm2, %v404_v34  ;;  %v2311_v34 = vpack.c.bf16 %v2044_v33, %v2043_v32  ;;  %v735_v32 = vld [vmem:[%s3286_s4 + $0x18] sm:$0xff] }
  0xa8   : > { %2312 = vmatpush1.bf16.msra.mxu1 %v2311_v34 }
  0xa9   : > { %v421_v35 = vld [vmem:[#allocation2 + $0x1] sm:$0xff]  ;;  %2313 = vmatprep.subr.bf16.mxu1 %v2444_v3 }
  0xaa   : > { %2167 = vmatprep.mubr.msk.f32.mxu0 %vm366_vm0, %v421_v35  ;;  %v410_v42 = vld [vmem:[#allocation2] sm:$0xff]  ;;  %v2065_v35 = vld [vmem:[%s3286_s4 + $0x170] sm:$0xff] }
  0xab   : > { %v2365_v37 = vpack.c.bf16 %v2066_v36, %v2065_v35 }
  0xad   : > { %v422_v39 = vld [vmem:[#allocation2 + $0x9] sm:$0xff] }
  0xae   : > { %2168 = vmatmul.mubr.msk.f32.vlgmr.msra.gmra.mrb[0].mxu0 %vm366_vm0, %v422_v39  ;;  %v411_v54 = vld [vmem:[#allocation2 + $0x8] sm:$0xff]  ;;  %v2046_v39 = vld [vmem:[%s3286_s4 + $0xf8] sm:$0xff] }
  0xaf   : > { %2266 = vmatpush3.bf16.msra.mxu0 %v2263_v29  ;;  %2188 = vmatprep.mubr.msk.f32.mxu0 %vm366_vm0, %v410_v42  ;;  %v595_v57 = vld [vmem:[#allocation2 + $0x2] sm:$0xff]  ;;  %v596_v63 = vld [vmem:[#allocation2 + $0xa] sm:$0xff]  ;;  %v2032_v42 = vld [vmem:[%s3285_s3] ss:$0 sm:$0xff] }
  0xb0   : > { %2268 = vmatprep.subr.bf16.mxu0 %v2267_v38  ;;  %v2064_v29 = vld [vmem:[%s3286_s4 + $0x168] sm:$0xff] }
  0xb1   : > { %v2362_v31 = vpack.c.bf16 %v2064_v29, %v2063_v28 }
  0xb3   : > { %2270 = vmatpush3.bf16.msra.mxu0 %v2267_v38  ;;  %v2045_v38 = vld [vmem:[%s3286_s4 + $0xf0] sm:$0xff] }
  0xb4   : > { %2272 = vmatprep.subr.bf16.mxu0 %v2271_v43  ;;  %v2314_v40 = vpack.c.bf16 %v2046_v39, %v2045_v38  ;;  %v2326_v38 = vpack.c.bf16 %v735_v32, %v734_v26 }
  0xb6   : > { %2315 = vmatpush1.bf16.msra.mxu1 %v2314_v40  ;;  %v736_v40 = vld [vmem:[%s3286_s4 + $0x20] sm:$0xff] }
  0xb7   : > { %2274 = vmatpush3.bf16.msra.mxu0 %v2271_v43  ;;  %v2368_v43 = vpack.c.bf16 %v2068_v41, %v2067_v6  ;;  %2316 = vmatprep.subr.bf16.mxu1 %v2444_v3  ;;  %v737_v6 = vld [vmem:[%s3286_s4 + $0x28] sm:$0xff] }
  0xb8   : > { %2276 = vmatprep.subr.bf16.mxu0 %v2275_v46  ;;  %v2329_v44 = vpack.c.bf16 %v737_v6, %v736_v40 }
  0xba   : > { %2318 = vmatpush1.bf16.msra.mxu1 %v2317_v48  ;;  %v740_v48 = vld [vmem:[%s3286_s4 + $0x40] sm:$0xff] }
  0xbb   : > { %2278 = vmatpush3.bf16.msra.mxu0 %v2275_v46  ;;  %v2069_v46 = vld [vmem:[%s3286_s4 + $0x190] sm:$0xff]  ;;  %2319 = vmatprep.subr.bf16.mxu1 %v2444_v3 }
  0xbc   : > { %2186 = vmatprep.subr.mxu0 %v420_v47 }
  0xbe   : > { %2321 = vmatpush1.bf16.msra.mxu1 %v2320_v59 }
  0xbf   : > { %2187 = vmatpush3.msra.mxu0 %v420_v47  ;;  %2322 = vmatprep.subr.bf16.mxu1 %v2444_v3 }
  0xc0   : > { %2189 = vmatmul.mubr.msk.f32.vlgmr.msra.gmra.mrb[0].mxu0 %vm366_vm0, %v411_v54  ;;  %2280 = vmatprep.subr.bf16.mxu0 %v2279_v52  ;;  %v2371_v54 = vpack.c.bf16 %v2070_v49, %v2069_v46  ;;  %v739_v46 = vld [vmem:[%s3286_s4 + $0x38] sm:$0xff]  ;;  %v741_v49 = vld [vmem:[%s3286_s4 + $0x48] sm:$0xff] }
  0xc1   : > { %2282 = vmatpush3.bf16.msra.mxu0 %v2279_v52  ;;  %2209 = vmatprep.mubr.msk.f32.mxu0 %vm366_vm0, %v595_v57  ;;  %v2335_v50 = vpack.c.bf16 %v741_v49, %v740_v48 }
  0xc2   : > { %2284 = vmatprep.subr.bf16.mxu0 %v2283_v53 }
  0xc5   : > { %2286 = vmatpush3.bf16.msra.mxu0 %v2283_v53 }
  0xc6   : > { %2288 = vmatprep.subr.bf16.mxu0 %v2287_v58 }
  0xc9   : > { %2290 = vmatpush3.bf16.msra.mxu0 %v2287_v58 }
  0xca   : > { %2292 = vmatprep.subr.bf16.mxu0 %v2291_v61 }
  0xcd   : > { %2294 = vmatpush3.bf16.msra.mxu0 %v2291_v61  ;;  %v2374_v61 = vpack.c.bf16 %v2072_v56, %v2071_v55  ;;  %v745_v55 = vld [vmem:[%s3286_s4 + $0x68] sm:$0xff] }
  0xce   : > { %2207 = vmatprep.subr.mxu0 %v2029_v62 }
  0xd1   : > { %2208 = vmatpush3.msra.mxu0 %v2029_v62 }
  0xd2   : > { %2210 = vmatmul.mubr.msk.f32.vlgmr.msra.gmra.mrb[0].mxu0 %vm366_vm0, %v596_v63  ;;  %2349 = vmatprep.subr.bf16.mxu0 %v2444_v3  ;;  %vm1738_vm0 = vcmask 31744  }
  0xd3   : > { %2351 = vmatpush1.bf16.msra.mxu0 %v2350_v9 }
  0xd4   : > { %2352 = vmatprep.subr.bf16.mxu0 %v2444_v3 }
  0xd7   : > { %2354 = vmatpush1.bf16.msra.mxu0 %v2353_v13 }
  0xd8   : > { %2355 = vmatprep.subr.bf16.mxu0 %v2444_v3 }
  0xdb   : > { %2357 = vmatpush1.bf16.msra.mxu0 %v2356_v19 }
  0xdc   : > { %2358 = vmatprep.subr.bf16.mxu0 %v2444_v3 }
  0xdf   : > { %2360 = vmatpush1.bf16.msra.mxu0 %v2359_v25 }
  0xe0   : > { %2361 = vmatprep.subr.bf16.mxu0 %v2444_v3 }
  0xe3   : > { %2363 = vmatpush1.bf16.msra.mxu0 %v2362_v31 }
  0xe4   : > { %2364 = vmatprep.subr.bf16.mxu0 %v2444_v3 }
  0xe7   : > { %2366 = vmatpush1.bf16.msra.mxu0 %v2365_v37 }
  0xe8   : > { %2367 = vmatprep.subr.bf16.mxu0 %v2444_v3 }
  0xeb   : > { %2369 = vmatpush1.bf16.msra.mxu0 %v2368_v43 }
  0xec   : > { %2370 = vmatprep.subr.bf16.mxu0 %v2444_v3 }
  0xef   : > { %2372 = vmatpush1.bf16.msra.mxu0 %v2371_v54  ;;  %v744_v54 = vld [vmem:[%s3286_s4 + $0x60] sm:$0xff] }
  0xf0   : > { %2373 = vmatprep.subr.bf16.mxu0 %v2444_v3  ;;  %v2341_v56 = vpack.c.bf16 %v745_v55, %v744_v54 }
  0xf3   : > { %2375 = vmatpush1.bf16.msra.mxu0 %v2374_v61  ;;  %v749_v61 = vld [vmem:[%s3286_s4 + $0x88] sm:$0xff] }
 0x1a5   : > { %v2211_v47 = vpop.f32.mrb[0].mxu0 }
 0x1a6   : > { %v698_v52 = vadd.f32 %v2211_v47, %v2032_v42  ;;  %v679_v53 = vpop.f32.mrb[1].mxu0  ;;  %v2332_v47 = vpack.c.bf16 %v739_v46, %v738_v45  ;;  %v2076_v45 = vld [vmem:[%s3289_s7] ss:$0 sm:$0xff] }
 0x1a7   : > { %v697_v57 = vadd.f32 %v2032_v42, %v679_v53 }
 0x1a8   : > { %v700_v58 = vmax.f32 %v698_v52, 0.0  ;;  %v743_v52 = vld [vmem:[%s3286_s4 + $0x58] sm:$0xff] }
 0x1a9   : > { %v699_v60 = vmax.f32 %v697_v57, 0.0  ;;  %v2338_v53 = vpack.c.bf16 %v743_v52, %v742_v51  ;;  %v746_v57 = vld [vmem:[%s3286_s4 + $0x70] sm:$0xff] }
 0x1aa   : > { %v705_v62 = vrot.slane %v700_v58, 7  ;;  %v747_v58 = vld [vmem:[%s3286_s4 + $0x78] sm:$0xff] }
 0x1ab   : > { %v704_v63 = vrot.slane %v699_v60, 7  ;;  %v2344_v59 = vpack.c.bf16 %v747_v58, %v746_v57  ;;  %v748_v60 = vld [vmem:[%s3286_s4 + $0x80] sm:$0xff] }
 0x1ac   : > { %711 = vrot.lane.b32.xlu0 %v705_v62, %s2445_s20 }
 0x1ad   : > { %707 = vrot.lane.b32.xlu1 %v704_v63, %s2445_s20  ;;  %v706_v0 = vsel %vm703_vm5, %v704_v63, %v705_v62  ;;  %v2347_v62 = vpack.c.bf16 %v749_v61, %v748_v60 }
 0x1b1   : > { %709 = vrot.lane.b32.xlu1 %v706_v0, %s2445_s20  ;;  %v1083_v0 = vld [vmem:[%s3288_s6] sm:$0xff] }
 0x21e   : > { %v712_v1 = vpop.permute.xlu0 %711 }
 0x21f   : > { %725 = vst.msk [vmem:[#allocation3 + $0x20] sm:$0x1] %vm724_vm6, %v712_v1  ;;  %v708_v2 = vpop.permute.xlu1 %707 }
 0x220   : > { %727 = vst.msk [vmem:[#allocation3 + $0x28] sm:$0x1] %vm726_vm7, %v712_v1  ;;  %v1084_v1 = vld [vmem:[%s3288_s6 + $0x8] sm:$0xff] }
 0x221   : > { %717 = vst.msk [vmem:[#allocation3] sm:$0xfe] %vm716_vm8, %v708_v2 }
 0x222   : > { %719 = vst.msk [vmem:[#allocation3 + $0x8] sm:$0xfe] %vm718_vm9, %v708_v2  ;;  %v2376_v2 = vpack.c.bf16 %v1084_v1, %v1083_v0 }
 0x223   : > { %v710_v4 = vpop.permute.xlu1 %709 }
 0x224   : > { %721 = vst.msk [vmem:[#allocation3 + $0x10] sm:$0xff] %vm720_vm10, %v710_v4 }
 0x225   : > { %723 = vst.msk [vmem:[#allocation3 + $0x18] sm:$0xff] %vm722_vm11, %v710_v4  ;;  %v1086_v4 = vld [vmem:[%s3288_s6 + $0x18] sm:$0xff] }
 0x226   : > { %v752_v31 = vld [vmem:[#allocation3 + $0x20] sm:$0x1] }
 0x227   : > { %v753_v12 = vld [vmem:[#allocation3 + $0x28] sm:$0x1]  ;;  %v953_v33 = vld [vmem:[#allocation3 + $0x20] sm:$0x3]  ;;  %v786_v37 = vrot.slane %v752_v31, 1 }
 0x228   : > { %v750_v8 = vld [vmem:[#allocation3] sm:$0xfe]  ;;  %v954_v23 = vld [vmem:[#allocation3 + $0x28] sm:$0x3]  ;;  %v788_v25 = vrot.slane %v753_v12, 1  ;;  %v985_v39 = vrot.slane %v953_v33, 2  ;;  %v2388_v12 = vpack.c.bf16 %v1090_v11, %v1089_v10 }
 0x229   : > { %v751_v5 = vld [vmem:[#allocation3 + $0x8] sm:$0xfe]  ;;  %v951_v9 = vld [vmem:[#allocation3] sm:$0xfc]  ;;  %v780_v17 = vrot.slane %v750_v8, 1  ;;  %v987_v34 = vrot.slane %v954_v23, 2 }
 0x22a   : > { %v952_v7 = vld [vmem:[#allocation3 + $0x8] sm:$0xfc]  ;;  %v783_v14 = vrot.slane %v751_v5, 1  ;;  %v979_v18 = vrot.slane %v951_v9, 2  ;;  %v728_v63 = vld [vmem:[#allocation3] sm:$0xff]  ;;  %v1088_v8 = vld [vmem:[%s3288_s6 + $0x28] sm:$0xff] }
 0x22b   : > { %v982_v15 = vrot.slane %v952_v7, 2  ;;  %v2767_v16 = vld [vmem:[#allocation3 + $0x10] sm:$0xff]  ;;  %v729_v43 = vld [vmem:[#allocation3 + $0x8] sm:$0xff]  ;;  %v1098_v23 = vld [vmem:[%s3288_s6 + $0x78] sm:$0xff] }
 0x22c   : > { %v2765_v13 = vld [vmem:[#allocation3 + $0x18] sm:$0xff]  ;;  %v781_v21 = vrot.slane %v2767_v16, 1  ;;  %v980_v22 = vrot.slane %v2767_v16, 2  ;;  %v1087_v7 = vld [vmem:[%s3288_s6 + $0x20] sm:$0xff] }
 0x22d   : > { %v784_v19 = vrot.slane %v2765_v13, 1  ;;  %v983_v20 = vrot.slane %v2765_v13, 2  ;;  %v2384_v9 = vpack.c.bf16 %v1088_v8, %v1087_v7 }
 0x22e   : > { %v782_v29 = vsel %vm779_vm12, %v780_v17, %v781_v21  ;;  %v981_v30 = vsel %vm978_vm13, %v979_v18, %v980_v22  ;;  %v787_v41 = vsel %vm779_vm12, %v781_v21, %v786_v37  ;;  %v986_v42 = vsel %vm978_vm13, %v980_v22, %v985_v39  ;;  %v1094_v17 = vld [vmem:[%s3288_s6 + $0x58] sm:$0xff]  ;;  %v1097_v22 = vld [vmem:[%s3288_s6 + $0x70] sm:$0xff] }
 0x22f   : > { %v785_v27 = vsel %vm779_vm12, %v783_v14, %v784_v19  ;;  %v984_v28 = vsel %vm978_vm13, %v982_v15, %v983_v20  ;;  %v789_v35 = vsel %vm779_vm12, %v784_v19, %v788_v25  ;;  %v988_v36 = vsel %vm978_vm13, %v983_v20, %v987_v34  ;;  %v1092_v14 = vld [vmem:[%s3288_s6 + $0x48] sm:$0xff]  ;;  %v1095_v19 = vld [vmem:[%s3288_s6 + $0x60] sm:$0xff] }
 0x230   : > { %2051 = vmatprep.mubr.msk.f32.mxu1 %vm372_vm4, %v785_v27  ;;  %2073 = vmatprep.mubr.msk.f32.mxu0 %vm372_vm4, %v984_v28  ;;  %v1096_v20 = vld [vmem:[%s3288_s6 + $0x68] sm:$0xff] }
 0x231   : > { %861 = vmatmul.mubr.f32.vlgmr.msra.gmra.mrb[0].mxu1 %v782_v29  ;;  %1060 = vmatmul.mubr.f32.vlgmr.msra.gmra.mrb[2].mxu0 %v981_v30  ;;  %v2400_v21 = vpack.c.bf16 %v1096_v20, %v1095_v19 }
 0x232   : > { %2324 = vmatpush1.bf16.msra.mxu1 %v2323_v24  ;;  %2052 = vmatprep.mubr.msk.f32.mxu1 %vm372_vm4, %v789_v35  ;;  %v2404_v24 = vpack.c.bf16 %v1098_v23, %v1097_v22 }
 0x233   : > { %2074 = vmatprep.mubr.msk.f32.mxu0 %vm372_vm4, %v988_v36  ;;  %2325 = vmatprep.subr.bf16.mxu1 %v2444_v3  ;;  %v2075_v36 = vld [vmem:[%s3287_s5] ss:$0 sm:$0xff] }
 0x235   : > { %866 = vmatmul.mubr.f32.gmra.mrb[2].mxu1 %v787_v41  ;;  %1065 = vmatmul.mubr.f32.gmra.mrb[4].mxu0 %v986_v42 }
 0x236   : > { %2327 = vmatpush1.bf16.msra.mxu1 %v2326_v38  ;;  %2053 = vmatprep.mubr.msk.f32.mxu1 %vm372_vm4, %v729_v43 }
 0x237   : > { %2328 = vmatprep.subr.bf16.mxu1 %v2444_v3 }
 0x23a   : > { %2330 = vmatpush1.bf16.msra.mxu1 %v2329_v44 }
 0x23b   : > { %2331 = vmatprep.subr.bf16.mxu1 %v2444_v3 }
 0x23e   : > { %2333 = vmatpush1.bf16.msra.mxu1 %v2332_v47 }
 0x23f   : > { %2334 = vmatprep.subr.bf16.mxu1 %v2444_v3 }
 0x242   : > { %2336 = vmatpush1.bf16.msra.mxu1 %v2335_v50 }
 0x243   : > { %2337 = vmatprep.subr.bf16.mxu1 %v2444_v3 }
 0x246   : > { %2339 = vmatpush1.bf16.msra.mxu1 %v2338_v53 }
 0x247   : > { %2340 = vmatprep.subr.bf16.mxu1 %v2444_v3 }
 0x24a   : > { %2342 = vmatpush1.bf16.msra.mxu1 %v2341_v56 }
 0x24b   : > { %2343 = vmatprep.subr.bf16.mxu1 %v2444_v3 }
 0x24e   : > { %2345 = vmatpush1.bf16.msra.mxu1 %v2344_v59 }
 0x24f   : > { %2346 = vmatprep.subr.bf16.mxu1 %v2444_v3  ;;  %v1085_v3 = vld [vmem:[%s3288_s6 + $0x10] sm:$0xff] }
 0x250   : > { %v2380_v5 = vpack.c.bf16 %v1086_v4, %v1085_v3 }
 0x252   : > { %2348 = vmatpush1.bf16.msra.mxu1 %v2347_v62 }
 0x253   : > { %2377 = vmatprep.subr.bf16.mxu1 %v2376_v2 }
 0x255   : > { %941 = vmatmul.mubr.f32.vlgmr.msra.gmra.mrb[4].mxu1 %v728_v63 }
 0x256   : > { %2054 = vmatprep.mubr.msk.f32.mxu1 %vm372_vm4, %v2765_v13  ;;  %2379 = vmatpush3.bf16.msra.mxu1 %v2376_v2  ;;  %v1091_v13 = vld [vmem:[%s3288_s6 + $0x40] sm:$0xff]  ;;  %vm1245_vm4 = vcmask 123968  }
 0x257   : > { %2381 = vmatprep.subr.bf16.mxu1 %v2380_v5  ;;  %v2392_v15 = vpack.c.bf16 %v1092_v14, %v1091_v13 }
 0x259   : > { %946 = vmatmul.mubr.f32.gmra.mrb[6].mxu1 %v2767_v16  ;;  %v1093_v16 = vld [vmem:[%s3288_s6 + $0x50] sm:$0xff] }
 0x25a   : > { %2383 = vmatpush3.bf16.msra.mxu1 %v2380_v5  ;;  %v2396_v18 = vpack.c.bf16 %v1094_v17, %v1093_v16 }
 0x25b   : > { %2385 = vmatprep.subr.bf16.mxu1 %v2384_v9 }
 0x25e   : > { %2387 = vmatpush3.bf16.msra.mxu1 %v2384_v9 }
 0x25f   : > { %2389 = vmatprep.subr.bf16.mxu1 %v2388_v12 }
 0x262   : > { %2391 = vmatpush3.bf16.msra.mxu1 %v2388_v12 }
 0x263   : > { %2393 = vmatprep.subr.bf16.mxu1 %v2392_v15 }
 0x266   : > { %2395 = vmatpush3.bf16.msra.mxu1 %v2392_v15 }
 0x267   : > { %2397 = vmatprep.subr.bf16.mxu1 %v2396_v18 }
 0x26a   : > { %2399 = vmatpush3.bf16.msra.mxu1 %v2396_v18 }
 0x26b   : > { %2401 = vmatprep.subr.bf16.mxu1 %v2400_v21 }
 0x26e   : > { %2403 = vmatpush3.bf16.msra.mxu1 %v2400_v21 }
 0x26f   : > { %2405 = vmatprep.subr.bf16.mxu1 %v2404_v24 }
 0x272   : > { %2407 = vmatpush3.bf16.msra.mxu1 %v2404_v24 }
 0x304   : > { %v862_v25 = vpop.f32.mrb[0].mxu1  ;;  %v1061_v26 = vpop.f32.mrb[2].mxu0 }
 0x305   : > { %v864_v27 = vpop.f32.mrb[1].mxu1  ;;  %v1063_v28 = vpop.f32.mrb[3].mxu0 }
 0x308   : > { %v867_v29 = vpop.f32.mrb[2].mxu1  ;;  %v1066_v30 = vpop.f32.mrb[4].mxu0 }
 0x309   : > { %v869_v31 = vpop.f32.mrb[3].mxu1  ;;  %v1068_v32 = vpop.f32.mrb[5].mxu0 }
 0x328   : > { %v942_v33 = vpop.f32.mrb[4].mxu1 }
 0x329   : > { %v943_v34 = vadd.f32 %v942_v33, %v862_v25  ;;  %v944_v35 = vpop.f32.mrb[5].mxu1 }
 0x32b   : > { %v1070_v37 = vadd.f32 %v1061_v26, %v943_v34 }
 0x32c   : > { %v947_v38 = vpop.f32.mrb[6].mxu1 }
 0x32d   : > { %v948_v39 = vadd.f32 %v947_v38, %v867_v29  ;;  %v949_v40 = vpop.f32.mrb[7].mxu1  ;;  %v1079_v6 = vadd.f32 %v2075_v36, %v1070_v37 }
 0x32f   : > { %v1071_v41 = vadd.f32 %v1066_v30, %v948_v39  ;;  %v1081_v42 = vmax.f32 %v1079_v6, 0.0 }
 0x331   : > { %v1080_v43 = vadd.f32 %v2075_v36, %v1071_v41  ;;  %2244 = vmatprep.mubr.f32.mxu1 %v1081_v42  ;;  %v1183_v51 = vrot.slane %v1081_v42, 7 }
 0x333   : > { %v1082_v44 = vmax.f32 %v1080_v43, 0.0 }
 0x335   : > { %2245 = vmatmul.mubr.f32.vlgmr.msra.gmra.mrb[8].mxu1 %v1082_v44  ;;  %v1184_v50 = vrot.slane %v1082_v44, 7 }
 0x337   : > { %v1185_v52 = vsel %vm703_vm5, %v1183_v51, %v1184_v50 }
 0x408   : > { %v2246_v46 = vpop.f32.mrb[8].mxu1 }
 0x409   : > { %v1178_v47 = vadd.f32 %v2246_v46, %v2076_v45  ;;  %v1172_v48 = vpop.f32.mrb[9].mxu1 }
 0x40a   : > { %v1173_v49 = vadd.f32 %v2076_v45, %v1172_v48 }
 0x40b   : > { %1713 = vrot.lane.b32.xlu0 %v1178_v47, %s2443_s19 }
 0x40c   : > { %1711 = vrot.lane.b32.xlu1 %v1173_v49, %s2443_s19 }
 0x40f   : > { %1188 = vrot.lane.b32.xlu0 %v1185_v52, %s2445_s20 }
 0x410   : > { %1186 = vrot.lane.b32.xlu1 %v1183_v51, %s2445_s20 }
 0x413   : > { %1201 = vrot.lane.b32.xlu0 %v1081_v42, %s2445_s20 }
 0x414   : > { %1190 = vrot.lane.b32.xlu1 %v1184_v50, %s2445_s20 }
 0x47d   : > { %v1714_v53 = vpop.permute.xlu0 %1713 }
 0x47e   : > { %1718 = vst.msk [vmem:[#allocation5 + $0x9] sm:$0xff] %vm407_vm2, %v1714_v53  ;;  %v1712_v54 = vpop.permute.xlu1 %1711 }
 0x47f   : > { %1722 = vst.msk [vmem:[#allocation5 + $0xa] sm:$0x80] %vm1721_vm14, %v1714_v53 }
 0x480   : > { %1717 = vst.msk [vmem:[#allocation5 + $0x1] sm:$0xff] %vm407_vm2, %v1712_v54  ;;  %vm1225_vm2 = vcmask 58368  }
 0x481   : > { %1720 = vst.msk [vmem:[#allocation5] sm:$0x1] %vm1719_vm15, %v1712_v54  ;;  %v1189_v55 = vpop.permute.xlu0 %1188 }
 0x482   : > { %1197 = vst.msk [vmem:[#allocation4 + $0x10] sm:$0xff] %vm720_vm10, %v1189_v55  ;;  %v1187_v56 = vpop.permute.xlu1 %1186 }
 0x483   : > { %1198 = vst.msk [vmem:[#allocation4 + $0x18] sm:$0xff] %vm722_vm11, %v1189_v55 }
 0x484   : > { %1195 = vst.msk [vmem:[#allocation4] sm:$0xfe] %vm716_vm8, %v1187_v56  ;;  %vm1758_vm8 = vcmask 589344  }
 0x485   : > { %1196 = vst.msk [vmem:[#allocation4 + $0x8] sm:$0xfe] %vm718_vm9, %v1187_v56  ;;  %v1202_v57 = vpop.permute.xlu0 %1201 }
 0x486   : > { %1204 = vst.msk [vmem:[#allocation4] sm:$0x1] %vm724_vm6, %v1202_v57  ;;  %v1191_v58 = vpop.permute.xlu1 %1190  ;;  %v1725_v61 = vld [vmem:[#allocation5 + $0x10] sm:$0x3] }
 0x487   : > { %1205 = vst.msk [vmem:[#allocation4 + $0x8] sm:$0x1] %vm726_vm7, %v1202_v57  ;;  %v1724_v59 = vld [vmem:[#allocation5 + $0x8] sm:$0xff]  ;;  %1200 = vst.msk [vmem:[#allocation4 + $0x28] sm:$0x1] %vm726_vm7, %v1191_v58 }
 0x488   : > { %v1723_v60 = vld [vmem:[#allocation5] sm:$0xff]  ;;  %1199 = vst.msk [vmem:[#allocation4 + $0x20] sm:$0x1] %vm724_vm6, %v1191_v58  ;;  %1206 = vst.msk [vmem:[#allocation4 + $0x21] sm:$0x1] %vm724_vm6, %v1191_v58  ;;  %1731 = vrot.lane.b32.xlu0 %v1724_v59, %s2446_s25  ;;  %vm1349_vm6 = vcmask 982016  }
 0x489   : > { %1207 = vst.msk [vmem:[#allocation4 + $0x29] sm:$0x1] %vm726_vm7, %v1191_v58  ;;  %1729 = vrot.lane.b32.xlu1 %v1723_v60, %s2446_s25  ;;  %v1209_v63 = vld [vmem:[#allocation4 + $0x10] sm:$0xff]  ;;  %vm1761_vm7 = vcmask 583200  }
 0x48a   : > { %v1228_v3 = vld [vmem:[#allocation4 + $0x18] sm:$0xff] }
 0x48d   : > { %1733 = vrot.lane.b32.xlu1 %v1725_v61, %s2446_s25  ;;  %v1208_v62 = vld [vmem:[#allocation4] sm:$0xff] }
 0x48e   : > { %1214 = vrot.lane.b32.xlu0 %v1208_v62, %s2447_s26  ;;  %v1227_v1 = vld [vmem:[#allocation4 + $0x8] sm:$0xff] }
 0x48f   : > { %v1210_v0 = vld [vmem:[#allocation4 + $0x20] sm:$0x3] }
 0x490   : > { %v1229_v2 = vld [vmem:[#allocation4 + $0x28] sm:$0x3] }
 0x491   : > { %1216 = vrot.lane.b32.xlu1 %v1209_v63, %s2447_s26 }
 0x492   : > { %1218 = vrot.lane.b32.xlu0 %v1210_v0, %s2447_s26 }
 0x495   : > { %1233 = vrot.lane.b32.xlu1 %v1227_v1, %s2445_s20 }
 0x496   : > { %1235 = vrot.lane.b32.xlu0 %v1228_v3, %s2445_s20 }
 0x499   : > { %1237 = vrot.lane.b32.xlu1 %v1229_v2, %s2445_s20 }
 0x4fa   : > { %v1732_v4 = vpop.permute.xlu0 %1731 }
 0x4fb   : > { %v1730_v5 = vpop.permute.xlu1 %1729  ;;  %1740 = vst.msk [vmem:[#allocation5 + $0x8] sm:$0xff] %vm1738_vm0, %v1732_v4 }
 0x4fc   : > { %1739 = vst.msk [vmem:[#allocation5] sm:$0xff] %vm1738_vm0, %v1730_v5 }
 0x4ff   : > { %v1734_v7 = vpop.permute.xlu1 %1733 }
 0x500   : > { %1742 = vst.msk [vmem:[#allocation5 + $0x10] sm:$0x3] %vm1741_vm1, %v1734_v7  ;;  %v1215_v8 = vpop.permute.xlu0 %1214 }
 0x501   : > { %1223 = vst.msk [vmem:[#allocation4] sm:$0xff] %vm722_vm11, %v1215_v8 }
 0x503   : > { %v1217_v9 = vpop.permute.xlu1 %1216 }
 0x504   : > { %1224 = vst.msk [vmem:[#allocation4 + $0x10] sm:$0xff] %vm722_vm11, %v1217_v9  ;;  %v1219_v10 = vpop.permute.xlu0 %1218 }
 0x505   : > { %1226 = vst.msk [vmem:[#allocation4 + $0x20] sm:$0x3] %vm1225_vm2, %v1219_v10  ;;  %v1744_v10 = vld [vmem:[#allocation5 + $0x8] sm:$0xff] }
 0x507   : > { %v1234_v11 = vpop.permute.xlu1 %1233 }
 0x508   : > { %1243 = vst.msk [vmem:[#allocation4 + $0x8] sm:$0xff] %vm1242_vm3, %v1234_v11  ;;  %v1236_v12 = vpop.permute.xlu0 %1235  ;;  %v2929_v13 = vld [vmem:[#allocation4] sm:$0xfe] }
 0x509   : > { %v2931_v14 = vld [vmem:[#allocation4] sm:$0xff]  ;;  %1244 = vst.msk [vmem:[#allocation4 + $0x18] sm:$0xff] %vm1242_vm3, %v1236_v12  ;;  %v1268_v17 = vrot.slane %v2929_v13, 1  ;;  %v2986_v44 = vmul.f32 0.5625, %v2929_v13 }
 0x50a   : > { %v1309_v19 = vmul.f32 0.0625, %v2931_v14  ;;  %v1745_v11 = vld [vmem:[#allocation5 + $0x10] sm:$0x3] }
 0x50b   : > { %v1238_v15 = vpop.permute.xlu1 %1237  ;;  %v2933_v16 = vld [vmem:[#allocation4 + $0x10] sm:$0xff] }
 0x50c   : > { %1246 = vst.msk [vmem:[#allocation4 + $0x28] sm:$0x3] %vm1245_vm4, %v1238_v15  ;;  %v1269_v18 = vrot.slane %v2933_v16, 1  ;;  %v2939_v20 = vmul.f32 0.0625, %v2933_v16  ;;  %v2942_v22 = vld [vmem:[#allocation4 + $0x20] sm:$0x1] }
 0x50d   : > { %v1271_v23 = vrot.slane %v2942_v22, 1  ;;  %v2947_v25 = vrot.slane %v1309_v19, 7  ;;  %v2994_v53 = vmul.f32 0.5625, %v2942_v22  ;;  %v3007_v0 = vmul.f32 0.5625, %v2933_v16  ;;  %v1743_v15 = vld [vmem:[#allocation5] sm:$0xff] }
 0x50e   : > { %v1270_v21 = vsel %vm779_vm12, %v1268_v17, %v1269_v18  ;;  %v2950_v26 = vrot.slane %v2939_v20, 7 }
 0x50f   : > { %1273 = vrot.lane.b32.xlu1 %v1270_v21, %s2445_s20  ;;  %v1272_v24 = vsel %vm779_vm12, %v1269_v18, %v1271_v23  ;;  %v2962_v29 = vld [vmem:[#allocation4 + $0x8] sm:$0xfe]  ;;  %v1473_v18 = vrot.slane %v2929_v13, 7  ;;  %v1474_v23 = vrot.slane %v2933_v16, 7 }
 0x510   : > { %1275 = vrot.lane.b32.xlu0 %v1272_v24, %s2445_s20  ;;  %v2955_v27 = vld [vmem:[#allocation4 + $0x18] sm:$0xff]  ;;  %v2960_v28 = vsel %vm703_vm5, %v2947_v25, %v2950_v26  ;;  %v1362_v32 = vrot.slane %v2962_v29, 1  ;;  %v2979_v36 = vld [vmem:[#allocation4 + $0x8] sm:$0xff]  ;;  %v2989_v45 = vmul.f32 0.5625, %v2962_v29  ;;  %v1579_v12 = vrot.slane %v2962_v29, 7 }
 0x511   : > { %v1363_v30 = vrot.slane %v2955_v27, 1  ;;  %v3004_v63 = vmul.f32 0.5625, %v2955_v27  ;;  %v1580_v17 = vrot.slane %v2955_v27, 7  ;;  %v1475_v29 = vsel %vm703_vm5, %v1473_v18, %v1474_v23 }
 0x513   : > { %1316 = vrot.lane.b32.xlu1 %v2947_v25, %s2445_s20  ;;  %v2969_v31 = vld [vmem:[#allocation4 + $0x28] sm:$0x1]  ;;  %v1364_v33 = vsel %vm779_vm12, %v1362_v32, %v1363_v30  ;;  %v1581_v19 = vsel %vm703_vm5, %v1579_v12, %v1580_v17  ;;  %v1411_v32 = vmul.f32 0.0625, %v2979_v36 }
 0x514   : > { %1318 = vrot.lane.b32.xlu0 %v2960_v28, %s2445_s20  ;;  %v1365_v34 = vrot.slane %v2969_v31, 1  ;;  %v2997_v54 = vmul.f32 0.5625, %v2969_v31 }
 0x516   : > { %v1366_v35 = vsel %vm779_vm12, %v1363_v30, %v1365_v34  ;;  %v1476_v30 = vrot.slane %v2942_v22, 7  ;;  %v3048_v34 = vld [vmem:[#allocation4 + $0x20] sm:$0x3] }
 0x517   : > { %1320 = vrot.lane.b32.xlu1 %v2950_v26, %s2445_s20 }
 0x518   : > { %1367 = vrot.lane.b32.xlu0 %v1270_v21, %s2447_s26  ;;  %v1582_v21 = vrot.slane %v2969_v31, 7  ;;  %v1477_v13 = vsel %vm703_vm5, %v1474_v23, %v1476_v30  ;;  %v3040_v31 = vld [vmem:[#allocation4] sm:$0xfc] }
 0x519   : > { %v1527_v22 = vmul.f32 0.0625, %v3040_v31 }
 0x51b   : > { %1369 = vrot.lane.b32.xlu1 %v1364_v33, %s2447_s26  ;;  %v1412_v33 = vmul.f32 0.0625, %v2955_v27 }
 0x51c   : > { %1371 = vrot.lane.b32.xlu0 %v1272_v24, %s2447_s26  ;;  %v1583_v24 = vsel %vm703_vm5, %v1580_v17, %v1582_v21 }
 0x51f   : > { %1373 = vrot.lane.b32.xlu1 %v1366_v35, %s2447_s26  ;;  %v1415_v35 = vrot.slane %v1411_v32, 7 }
 0x581   : > { %v1274_v37 = vpop.permute.xlu1 %1273 }
 0x582   : > { %v1279_v38 = vadd.f32 %v1274_v37, %v2931_v14  ;;  %v1280_v39 = vadd.f32 %v1274_v37, %v2979_v36  ;;  %v1276_v41 = vpop.permute.xlu0 %1275  ;;  %v1531_v37 = vrot.slane %v1527_v22, 1 }
 0x583   : > { %v1281_v42 = vadd.f32 %v1276_v41, %v2933_v16  ;;  %v1282_v43 = vadd.f32 %v1276_v41, %v2955_v27 }
 0x584   : > { %v1283_v40 = vmul.f32 0.1875, %v1279_v38  ;;  %v1284_v6 = vmul.f32 0.1875, %v1280_v39  ;;  %v1416_v38 = vrot.slane %v1412_v33, 7  ;;  %v1528_v39 = vmul.f32 0.0625, %v3048_v34 }
 0x585   : > { %v1317_v48 = vpop.permute.xlu1 %1316  ;;  %v1285_v49 = vmul.f32 0.1875, %v1281_v42  ;;  %v1286_v50 = vmul.f32 0.1875, %v1282_v43 }
 0x586   : > { %v1291_v46 = vrot.slane %v1283_v40, 7  ;;  %v1292_v47 = vrot.slane %v1284_v6, 7  ;;  %v1319_v7 = vpop.permute.xlu0 %1318  ;;  %v3055_v40 = vld [vmem:[#allocation4 + $0x8] sm:$0xfc]  ;;  %v1417_v6 = vsel %vm703_vm5, %v1415_v35, %v1416_v38  ;;  %v1534_v41 = vrot.slane %v1528_v39, 1 }
 0x587   : > { %v1293_v55 = vrot.slane %v1285_v49, 7  ;;  %v1295_v56 = vrot.slane %v1286_v50, 7  ;;  %v1645_v42 = vmul.f32 0.0625, %v3055_v40 }
 0x588   : > { %v1303_v51 = vadd.f32 %v1291_v46, %v2986_v44  ;;  %v1304_v52 = vadd.f32 %v1292_v47, %v2989_v45 }
 0x589   : > { %v1294_v59 = vsel %vm703_vm5, %v1291_v46, %v1293_v55  ;;  %v1296_v60 = vsel %vm703_vm5, %v1292_v47, %v1295_v56  ;;  %v1307_v61 = vadd.f32 %v1293_v55, %v2994_v53  ;;  %v1308_v62 = vadd.f32 %v1295_v56, %v2997_v54  ;;  %v1321_v1 = vpop.permute.xlu1 %1320 }
 0x58a   : > { %v1325_v57 = vadd.f32 %v1317_v48, %v1303_v51  ;;  %v1326_v58 = vadd.f32 %v1317_v48, %v1304_v52  ;;  %v1305_v4 = vadd.f32 %v1294_v59, %v3007_v0  ;;  %v1306_v5 = vadd.f32 %v1296_v60, %v3004_v63  ;;  %v1368_v51 = vpop.permute.xlu0 %1367 }
 0x58b   : > { %v1329_v3 = vadd.f32 %v1321_v1, %v1307_v61  ;;  %v1330_v2 = vadd.f32 %v1321_v1, %v1308_v62  ;;  %v1649_v47 = vrot.slane %v1645_v42, 1 }
 0x58c   : > { %1339 = vrot.lane.b32.xlu1 %v1326_v58, %s2447_s26  ;;  %1337 = vrot.lane.b32.xlu0 %v1325_v57, %s2447_s26  ;;  %v1327_v8 = vadd.f32 %v1319_v7, %v1305_v4  ;;  %v1328_v9 = vadd.f32 %v1319_v7, %v1306_v5 }
 0x58d   : > { %v1370_v52 = vpop.permute.xlu1 %1369 }
 0x58e   : > { %v1372_v55 = vpop.permute.xlu0 %1371 }
 0x590   : > { %1347 = vrot.lane.b32.xlu1 %v1330_v2, %s2447_s26  ;;  %1345 = vrot.lane.b32.xlu0 %v1329_v3, %s2447_s26 }
 0x591   : > { %v1374_v56 = vpop.permute.xlu1 %1373 }
 0x592   : > { %v1376_v21 = vsel %vm1349_vm6, %v1372_v55, %v1374_v56  ;;  %v1384_v39 = vadd.f32 %v1374_v56, %v2955_v27 }
 0x593   : > { %v1383_v32 = vadd.f32 %v1376_v21, %v2933_v16 }
 0x594   : > { %1343 = vrot.lane.b32.xlu1 %v1328_v9, %s2447_s26  ;;  %1341 = vrot.lane.b32.xlu0 %v1327_v8, %s2447_s26 }
 0x598   : > { %1751 = vrot.lane.b32.xlu1 %v1744_v10, %s2443_s19  ;;  %1753 = vrot.lane.b32.xlu0 %v1745_v11, %s2443_s19 }
 0x59c   : > { %1586 = vrot.lane.b32.xlu1 %v1579_v12, %s2447_s26  ;;  %1749 = vrot.lane.b32.xlu0 %v1743_v15, %s2443_s19 }
 0x5a0   : > { %1590 = vrot.lane.b32.xlu1 %v1581_v19, %s2447_s26  ;;  %1584 = vrot.lane.b32.xlu0 %v1473_v18, %s2447_s26  ;;  %v1375_v19 = vsel %vm1349_vm6, %v1368_v51, %v1370_v52 }
 0x5a4   : > { %1594 = vrot.lane.b32.xlu1 %v1583_v24, %s2447_s26  ;;  %1588 = vrot.lane.b32.xlu0 %v1475_v29, %s2447_s26  ;;  %v1381_v24 = vadd.f32 %v1375_v19, %v2931_v14  ;;  %v1382_v14 = vadd.f32 %v1370_v52, %v2979_v36  ;;  %v1388_v36 = vmul.f32 0.1875, %v1384_v39 }
 0x5a8   : > { %1480 = vrot.lane.b32.xlu1 %v1475_v29, %s2445_s20  ;;  %1592 = vrot.lane.b32.xlu0 %v1477_v13, %s2447_s26 }
 0x5ac   : > { %1418 = vrot.lane.b32.xlu1 %v2947_v25, %s2447_s26  ;;  %1478 = vrot.lane.b32.xlu0 %v1473_v18, %s2445_s20  ;;  %v1532_v25 = vrot.slane %v2939_v20, 1  ;;  %v3061_v20 = vld [vmem:[#allocation4 + $0x28] sm:$0x3] }
 0x5ad   : > { %v1646_v46 = vmul.f32 0.0625, %v3061_v20 }
 0x5ae   : > { %v1535_v43 = vsel %vm779_vm12, %v1532_v25, %v1534_v41 }
 0x5af   : > { %v1652_v49 = vrot.slane %v1646_v46, 1 }
 0x5b0   : > { %1422 = vrot.lane.b32.xlu1 %v2960_v28, %s2447_s26  ;;  %1482 = vrot.lane.b32.xlu0 %v1477_v13, %s2445_s20  ;;  %v1533_v28 = vsel %vm779_vm12, %v1531_v37, %v1532_v25 }
 0x5b4   : > { %1426 = vrot.lane.b32.xlu1 %v2950_v26, %s2447_s26  ;;  %1420 = vrot.lane.b32.xlu0 %v1415_v35, %s2447_s26  ;;  %v1650_v26 = vrot.slane %v1412_v33, 1  ;;  %v1385_v33 = vmul.f32 0.1875, %v1381_v24 }
 0x5b6   : > { %v1651_v48 = vsel %vm779_vm12, %v1649_v47, %v1650_v26  ;;  %v1653_v50 = vsel %vm779_vm12, %v1650_v26, %v1652_v49  ;;  %v1386_v26 = vmul.f32 0.1875, %v1382_v14 }
 0x5b8   : > { %1654 = vrot.lane.b32.xlu1 %v1533_v28, %s2447_s26  ;;  %1424 = vrot.lane.b32.xlu0 %v1417_v6, %s2447_s26  ;;  %v1393_v6 = vrot.slane %v1385_v33, 7  ;;  %v1394_v52 = vrot.slane %v1386_v26, 7 }
 0x5bc   : > { %1658 = vrot.lane.b32.xlu1 %v1535_v43, %s2447_s26  ;;  %1428 = vrot.lane.b32.xlu0 %v1416_v38, %s2447_s26  ;;  %v1387_v38 = vmul.f32 0.1875, %v1383_v32 }
 0x5be   : > { %v1395_v46 = vrot.slane %v1387_v38, 7 }
 0x5c0   : > { %1662 = vrot.lane.b32.xlu1 %v1534_v41, %s2447_s26  ;;  %1656 = vrot.lane.b32.xlu0 %v1651_v48, %s2447_s26  ;;  %v1396_v56 = vsel %vm703_vm5, %v1393_v6, %v1395_v46 }
 0x5c4   : > { %1536 = vrot.lane.b32.xlu1 %v1533_v28, %s2445_s20  ;;  %1660 = vrot.lane.b32.xlu0 %v1653_v50, %s2447_s26  ;;  %v1405_v50 = vadd.f32 %v1393_v6, %v2986_v44 }
 0x5c8   : > { %1540 = vrot.lane.b32.xlu1 %v1534_v41, %s2445_s20  ;;  %1664 = vrot.lane.b32.xlu0 %v1652_v49, %s2447_s26 }
 0x5cc   : > { %1538 = vrot.lane.b32.xlu0 %v1535_v43, %s2445_s20 }
 0x5fe   : > { %v1338_v57 = vpop.permute.xlu0 %1337  ;;  %v1340_v58 = vpop.permute.xlu1 %1339 }
 0x5ff   : > { %v1350_v59 = vsel %vm1349_vm6, %v1338_v57, %v1340_v58  ;;  %v1397_v57 = vrot.slane %v1388_v36, 7 }
 0x600   : > { %1356 = vst [vmem:[%s3083_s11 - $0x1] sm:$0xfe] %v1350_v59 }
 0x601   : > { %v1398_v21 = vsel %vm703_vm5, %v1394_v52, %v1397_v57  ;;  %vm1805_vm5 = vcmask 523264  }
 0x602   : > { %v1346_v60 = vpop.permute.xlu0 %1345  ;;  %v1348_v61 = vpop.permute.xlu1 %1347  ;;  %v1408_v38 = vadd.f32 %v1398_v21, %v3004_v63 }
 0x603   : > { %v1352_v62 = vsel %vm1349_vm6, %v1346_v60, %v1348_v61 }
 0x604   : > { %1358 = vst [vmem:[%s3083_s11 + $0xf] sm:$0x1] %v1352_v62 }
 0x606   : > { %v1342_v1 = vpop.permute.xlu0 %1341  ;;  %v1344_v3 = vpop.permute.xlu1 %1343 }
 0x607   : > { %v1351_v2 = vsel %vm1349_vm6, %v1342_v1, %v1344_v3  ;;  %v1407_v3 = vadd.f32 %v1396_v56, %v3007_v0 }
 0x608   : > { %1357 = vst [vmem:[%s3083_s11 + $0x7] sm:$0xff] %v1351_v2 }
 0x60a   : > { %v1754_v4 = vpop.permute.xlu0 %1753  ;;  %v1752_v5 = vpop.permute.xlu1 %1751 }
 0x60b   : > { %1762 = vst.msk [vmem:[#allocation5 + $0x10] sm:$0x3] %vm1761_vm7, %v1754_v4  ;;  %v1406_v4 = vadd.f32 %v1394_v52, %v2989_v45 }
 0x60c   : > { %1760 = vst.msk [vmem:[#allocation5 + $0x8] sm:$0xff] %vm1758_vm8, %v1752_v5 }
 0x60e   : > { %v1750_v7 = vpop.permute.xlu0 %1749  ;;  %v3091_v8 = vpop.permute.xlu1 %1586 }
 0x60f   : > { %1759 = vst.msk [vmem:[#allocation5] sm:$0xff] %vm1758_vm8, %v1750_v7 }
 0x612   : > { %v3093_v9 = vpop.permute.xlu0 %1584  ;;  %v3095_v10 = vpop.permute.xlu1 %1590 }
 0x613   : > { %v3097_v11 = vld [vmem:[#allocation5 + $0x9] sm:$0xff]  ;;  %v1608_v56 = vadd.f32 %v3095_v10, %v2955_v27 }
 0x614   : > { %1775 = vrot.lane.b32.xlu0 %v3097_v11, %s2443_s19  ;;  %v3119_v13 = vld [vmem:[#allocation5 + $0x8] sm:$0xff] }
 0x615   : > { %v1786_v22 = vmul.f32 0.0625, %v3119_v13  ;;  %v3133_v43 = vld [vmem:[#allocation5 + $0xa] sm:$0xff] }
 0x616   : > { %v3101_v12 = vpop.permute.xlu0 %1588  ;;  %v3103_v15 = vpop.permute.xlu1 %1594  ;;  %v3105_v17 = vld [vmem:[#allocation5 + $0x1] sm:$0xff]  ;;  %v1846_v47 = vmul.f32 0.0625, %v3133_v43 }
 0x617   : > { %v3107_v18 = vld [vmem:[#allocation5] sm:$0xff]  ;;  %1773 = vrot.lane.b32.xlu1 %v3105_v17, %s2443_s19 }
 0x618   : > { %1810 = vrot.lane.b32.xlu0 %v3097_v11, %s2446_s25  ;;  %v1785_v23 = vmul.f32 0.0625, %v3107_v18  ;;  %v3126_v25 = vld [vmem:[#allocation5 + $0x2] sm:$0xff] }
 0x619   : > { %v1845_v28 = vmul.f32 0.0625, %v3126_v25 }
 0x61a   : > { %v3117_v29 = vpop.permute.xlu0 %1592  ;;  %v1481_v30 = vpop.permute.xlu1 %1480 }
 0x61b   : > { %1808 = vrot.lane.b32.xlu1 %v3105_v17, %s2446_s25  ;;  %v1489_v58 = vadd.f32 %v1481_v30, %v2933_v16  ;;  %v1490_v61 = vadd.f32 %v1481_v30, %v2955_v27  ;;  %v1409_v30 = vadd.f32 %v1395_v46, %v2994_v53  ;;  %v1606_v27 = vadd.f32 %v3091_v8, %v3055_v40 }
 0x61c   : > { %1789 = vrot.lane.b32.xlu0 %v1785_v23, %s2443_s19 }
 0x61d   : > { %v1495_v7 = vmul.f32 0.1875, %v1489_v58  ;;  %v1496_v32 = vmul.f32 0.1875, %v1490_v61 }
 0x61e   : > { %v1479_v35 = vpop.permute.xlu0 %1478  ;;  %v1419_v37 = vpop.permute.xlu1 %1418 }
 0x61f   : > { %1791 = vrot.lane.b32.xlu1 %v1786_v22, %s2443_s19  ;;  %v1487_v48 = vadd.f32 %v1479_v35, %v3040_v31  ;;  %v1488_v59 = vadd.f32 %v1479_v35, %v3055_v40  ;;  %v1509_v46 = vrot.slane %v1496_v32, 1  ;;  %v1612_v40 = vmul.f32 0.1875, %v1606_v27 }
 0x620   : > { %1820 = vrot.lane.b32.xlu0 %v1785_v23, %s2446_s25 }
 0x621   : > { %v1493_v62 = vmul.f32 0.1875, %v1487_v48  ;;  %v1494_v19 = vmul.f32 0.1875, %v1488_v59 }
 0x622   : > { %v1483_v41 = vpop.permute.xlu0 %1482  ;;  %v1423_v42 = vpop.permute.xlu1 %1422 }
 0x623   : > { %1822 = vrot.lane.b32.xlu1 %v1786_v22, %s2446_s25  ;;  %v1505_v22 = vrot.slane %v1493_v62, 1  ;;  %v1491_v33 = vadd.f32 %v1483_v41, %v3048_v34  ;;  %v1492_v35 = vadd.f32 %v1483_v41, %v3061_v20  ;;  %v1508_v6 = vrot.slane %v1494_v19, 1 }
 0x624   : > { %1849 = vrot.lane.b32.xlu0 %v1845_v28, %s2443_s19 }
 0x625   : > { %v1497_v36 = vmul.f32 0.1875, %v1491_v33  ;;  %v1510_v52 = vsel %vm779_vm12, %v1508_v6, %v1509_v46 }
 0x626   : > { %v1421_v49 = vpop.permute.xlu0 %1420  ;;  %v1427_v51 = vpop.permute.xlu1 %1426 }
 0x627   : > { %v1430_v55 = vsel %vm1349_vm6, %v1419_v37, %v1421_v49  ;;  %1851 = vrot.lane.b32.xlu1 %v1846_v47, %s2443_s19  ;;  %v1440_v24 = vadd.f32 %v1421_v49, %v1406_v4 }
 0x628   : > { %1874 = vrot.lane.b32.xlu0 %v1845_v28, %s2446_s25  ;;  %v1439_v60 = vadd.f32 %v1430_v55, %v1405_v50  ;;  %v1506_v28 = vrot.slane %v1495_v7, 1  ;;  %v1597_v50 = vsel %vm1349_vm6, %v3101_v12, %v3095_v10  ;;  %v1596_v55 = vsel %vm1349_vm6, %v3093_v9, %v3091_v8 }
 0x629   : > { %v1607_v12 = vadd.f32 %v1597_v50, %v2933_v16  ;;  %v1605_v9 = vadd.f32 %v1596_v55, %v3040_v31  ;;  %v1614_v10 = vmul.f32 0.1875, %v1608_v56  ;;  %v1610_v16 = vadd.f32 %v3103_v15, %v3061_v20 }
 0x62a   : > { %v1425_v1 = vpop.permute.xlu0 %1424  ;;  %v3148_v2 = vpop.permute.xlu1 %1654  ;;  %v1507_v49 = vsel %vm779_vm12, %v1505_v22, %v1506_v28 }
 0x62b   : > { %v1431_v5 = vsel %vm1349_vm6, %v1423_v42, %v1425_v1  ;;  %1876 = vrot.lane.b32.xlu1 %v1846_v47, %s2446_s25  ;;  %v1442_v26 = vadd.f32 %v1425_v1, %v1408_v38  ;;  %v1498_v47 = vmul.f32 0.1875, %v1492_v35  ;;  %v1521_v59 = vadd.f32 %v1507_v49, %v2986_v44 }
 0x62c   : > { %1451 = vrot.lane.b32.xlu0 %v1439_v60, %s2447_s26  ;;  %v1441_v23 = vadd.f32 %v1431_v5, %v1407_v3  ;;  %v1511_v60 = vrot.slane %v1497_v36, 1  ;;  %v1598_v1 = vsel %vm1349_vm6, %v3117_v29, %v3103_v15  ;;  %v1522_v3 = vadd.f32 %v1510_v52, %v2989_v45 }
 0x62d   : > { %v1613_v7 = vmul.f32 0.1875, %v1607_v12  ;;  %v1609_v29 = vadd.f32 %v1598_v1, %v3048_v34  ;;  %v1611_v8 = vmul.f32 0.1875, %v1605_v9  ;;  %v1627_v20 = vrot.slane %v1614_v10, 1 }
 0x62e   : > { %v1429_v37 = vpop.permute.xlu0 %1428  ;;  %v3158_v14 = vpop.permute.xlu1 %1658  ;;  %v1512_v21 = vsel %vm779_vm12, %v1506_v28, %v1511_v60  ;;  %v1626_v35 = vrot.slane %v1612_v40, 1  ;;  %v1770_v10 = vmul.f32 0.5625, %v3097_v11 }
 0x62f   : > { %v1432_v39 = vsel %vm1349_vm6, %v1427_v51, %v1429_v37  ;;  %1453 = vrot.lane.b32.xlu1 %v1440_v24, %s2447_s26  ;;  %v1410_v51 = vadd.f32 %v1397_v57, %v2997_v54  ;;  %v1513_v57 = vrot.slane %v1498_v47, 1  ;;  %v1523_v31 = vadd.f32 %v1512_v21, %v3007_v0 }
 0x630   : > { %1455 = vrot.lane.b32.xlu0 %v1441_v23, %s2447_s26  ;;  %v1443_v42 = vadd.f32 %v1432_v39, %v1409_v30  ;;  %v1624_v15 = vrot.slane %v1613_v7, 1  ;;  %v1616_v30 = vmul.f32 0.1875, %v1610_v16  ;;  %v1615_v32 = vmul.f32 0.1875, %v1609_v29 }
 0x631   : > { %v1444_v58 = vadd.f32 %v1429_v37, %v1410_v51  ;;  %v1514_v23 = vsel %vm779_vm12, %v1509_v46, %v1513_v57  ;;  %v1623_v37 = vrot.slane %v1611_v8, 1  ;;  %v1525_v39 = vadd.f32 %v1511_v60, %v2994_v53 }
 0x632   : > { %v3164_v48 = vpop.permute.xlu0 %1656  ;;  %v3166_v41 = vpop.permute.xlu1 %1662  ;;  %v1524_v24 = vadd.f32 %v1514_v23, %v3004_v63  ;;  %v1526_v28 = vadd.f32 %v1513_v57, %v2997_v54  ;;  %v1631_v6 = vrot.slane %v1616_v30, 1  ;;  %v1628_v46 = vsel %vm779_vm12, %v1626_v35, %v1627_v20 }
 0x633   : > { %1457 = vrot.lane.b32.xlu1 %v1442_v26, %s2447_s26  ;;  %v1625_v26 = vsel %vm779_vm12, %v1623_v37, %v1624_v15  ;;  %v1666_v49 = vsel %vm1349_vm6, %v3148_v2, %v3164_v48  ;;  %v1640_v51 = vadd.f32 %v1628_v46, %v2989_v45 }
 0x634   : > { %1459 = vrot.lane.b32.xlu0 %v1443_v42, %s2447_s26  ;;  %v1629_v42 = vrot.slane %v1615_v32, 1  ;;  %v1639_v50 = vadd.f32 %v1625_v26, %v2986_v44  ;;  %v1632_v55 = vsel %vm779_vm12, %v1627_v20, %v1631_v6 }
 0x635   : > { %v1642_v44 = vadd.f32 %v1632_v55, %v3004_v63 }
 0x636   : > { %v1661_v61 = vpop.permute.xlu0 %1660  ;;  %v1537_v62 = vpop.permute.xlu1 %1536  ;;  %v1630_v52 = vsel %vm779_vm12, %v1624_v15, %v1629_v42  ;;  %v1675_v56 = vadd.f32 %v1666_v49, %v1639_v50  ;;  %v1643_v57 = vadd.f32 %v1629_v42, %v2994_v53  ;;  %v1769_v53 = vmul.f32 0.5625, %v3105_v17 }
 0x637   : > { %v1545_v4 = vadd.f32 %v1537_v62, %v1521_v59  ;;  %1461 = vrot.lane.b32.xlu1 %v1444_v58, %s2447_s26  ;;  %v1546_v5 = vadd.f32 %v1537_v62, %v1522_v3  ;;  %v1676_v58 = vadd.f32 %v3164_v48, %v1640_v51  ;;  %v1667_v59 = vsel %vm1349_vm6, %v3158_v14, %v1661_v61 }
 0x638   : > { %v1641_v2 = vadd.f32 %v1630_v52, %v3007_v0  ;;  %v1678_v12 = vadd.f32 %v1661_v61, %v1642_v44  ;;  %v1644_v48 = vadd.f32 %v1631_v6, %v2997_v54 }
 0x639   : > { %1557 = vrot.lane.b32.xlu0 %v1545_v4, %s2447_s26 }
 0x63a   : > { %v1665_v19 = vpop.permute.xlu0 %1664  ;;  %v1541_v38 = vpop.permute.xlu1 %1540  ;;  %v1677_v45 = vadd.f32 %v1667_v59, %v1641_v2 }
 0x63b   : > { %1559 = vrot.lane.b32.xlu1 %v1546_v5, %s2447_s26  ;;  %v1549_v36 = vadd.f32 %v1541_v38, %v1525_v39  ;;  %v1550_v47 = vadd.f32 %v1541_v38, %v1526_v28  ;;  %v1668_v60 = vsel %vm1349_vm6, %v3166_v41, %v1665_v19  ;;  %v1680_v14 = vadd.f32 %v1665_v19, %v1644_v48 }
 0x63c   : > { %v1679_v0 = vadd.f32 %v1668_v60, %v1643_v57 }
 0x63e   : > { %v1539_v22 = vpop.permute.xlu0 %1538 }
 0x63f   : > { %v1547_v33 = vadd.f32 %v1539_v22, %v1523_v31  ;;  %v1548_v34 = vadd.f32 %v1539_v22, %v1524_v24 }
 0x641   : > { %1563 = vrot.lane.b32.xlu1 %v1548_v34, %s2447_s26  ;;  %1561 = vrot.lane.b32.xlu0 %v1547_v33, %s2447_s26 }
 0x645   : > { %1567 = vrot.lane.b32.xlu1 %v1550_v47, %s2447_s26  ;;  %1565 = vrot.lane.b32.xlu0 %v1549_v36, %s2447_s26 }
 0x649   : > { %1689 = vrot.lane.b32.xlu1 %v1676_v58, %s2447_s26  ;;  %1687 = vrot.lane.b32.xlu0 %v1675_v56, %s2447_s26 }
 0x64d   : > { %1693 = vrot.lane.b32.xlu1 %v1678_v12, %s2447_s26  ;;  %1691 = vrot.lane.b32.xlu0 %v1677_v45, %s2447_s26 }
 0x651   : > { %1697 = vrot.lane.b32.xlu1 %v1680_v14, %s2447_s26  ;;  %1695 = vrot.lane.b32.xlu0 %v1679_v0, %s2447_s26 }
 0x686   : > { %v1776_v63 = vpop.permute.xlu0 %1775 }
 0x687   : > { %v1780_v61 = vadd.f32 %v1776_v63, %v3119_v13  ;;  %v1840_v29 = vadd.f32 %v1776_v63, %v3133_v43 }
 0x689   : > { %v1774_v1 = vpop.permute.xlu1 %1773  ;;  %v1782_v54 = vmul.f32 0.1875, %v1780_v61  ;;  %v1842_v11 = vmul.f32 0.1875, %v1840_v29 }
 0x68a   : > { %v1811_v62 = vpop.permute.xlu0 %1810  ;;  %v1779_v41 = vadd.f32 %v1774_v1, %v3107_v18  ;;  %v1839_v16 = vadd.f32 %v1774_v1, %v3126_v25 }
 0x68b   : > { %v1815_v3 = vadd.f32 %v1811_v62, %v3119_v13  ;;  %v1784_v40 = vadd.f32 %v1782_v54, %v1770_v10  ;;  %v1869_v15 = vadd.f32 %v1811_v62, %v3133_v43  ;;  %v1844_v38 = vadd.f32 %v1842_v11, %v1770_v10 }
 0x68c   : > { %v1781_v4 = vmul.f32 0.1875, %v1779_v41  ;;  %v1841_v31 = vmul.f32 0.1875, %v1839_v16 }
 0x68d   : > { %v1809_v9 = vpop.permute.xlu1 %1808  ;;  %v1817_v19 = vmul.f32 0.1875, %v1815_v3  ;;  %v1871_v37 = vmul.f32 0.1875, %v1869_v15 }
 0x68e   : > { %v1790_v27 = vpop.permute.xlu0 %1789  ;;  %v1783_v5 = vadd.f32 %v1781_v4, %v1769_v53  ;;  %v1814_v7 = vadd.f32 %v1809_v9, %v3107_v18  ;;  %v1868_v13 = vadd.f32 %v1809_v9, %v3126_v25  ;;  %v1843_v34 = vadd.f32 %v1841_v31, %v1769_v53 }
 0x68f   : > { %v1819_v18 = vadd.f32 %v1817_v19, %v1770_v10  ;;  %v1873_v26 = vadd.f32 %v1871_v37, %v1770_v10 }
 0x690   : > { %v1795_v21 = vadd.f32 %v1790_v27, %v1783_v5  ;;  %v1816_v23 = vmul.f32 0.1875, %v1814_v7  ;;  %v1870_v33 = vmul.f32 0.1875, %v1868_v13 }
 0x691   : > { %v1792_v8 = vpop.permute.xlu1 %1791 }
 0x692   : > { %v1821_v17 = vpop.permute.xlu0 %1820  ;;  %v1818_v24 = vadd.f32 %v1816_v23, %v1769_v53  ;;  %v1796_v20 = vadd.f32 %v1792_v8, %v1784_v40  ;;  %1799 = vrot.lane.b32.xlu0 %v1795_v21, %s2446_s25  ;;  %v1872_v43 = vadd.f32 %v1870_v33, %v1769_v53 }
 0x694   : > { %v1826_v30 = vadd.f32 %v1821_v17, %v1818_v24  ;;  %1801 = vrot.lane.b32.xlu1 %v1796_v20, %s2446_s25 }
 0x695   : > { %v1823_v22 = vpop.permute.xlu1 %1822 }
 0x696   : > { %v1850_v32 = vpop.permute.xlu0 %1849  ;;  %v1827_v35 = vadd.f32 %v1823_v22, %v1819_v18  ;;  %1830 = vrot.lane.b32.xlu0 %v1826_v30, %s2446_s25 }
 0x697   : > { %v1855_v25 = vadd.f32 %v1850_v32, %v1843_v34 }
 0x698   : > { %1832 = vrot.lane.b32.xlu1 %v1827_v35, %s2446_s25 }
 0x699   : > { %v1852_v28 = vpop.permute.xlu1 %1851 }
 0x69a   : > { %v1875_v39 = vpop.permute.xlu0 %1874  ;;  %v1856_v6 = vadd.f32 %v1852_v28, %v1844_v38  ;;  %1859 = vrot.lane.b32.xlu0 %v1855_v25, %s2446_s25 }
 0x69b   : > { %v1880_v42 = vadd.f32 %v1875_v39, %v1872_v43 }
 0x69c   : > { %1861 = vrot.lane.b32.xlu1 %v1856_v6, %s2446_s25 }
 0x69d   : > { %v1877_v36 = vpop.permute.xlu1 %1876 }
 0x69e   : > { %v1452_v46 = vpop.permute.xlu0 %1451  ;;  %v1881_v47 = vadd.f32 %v1877_v36, %v1873_v26  ;;  %1884 = vrot.lane.b32.xlu0 %v1880_v42, %s2446_s25 }
 0x6a0   : > { %1886 = vrot.lane.b32.xlu1 %v1881_v47, %s2446_s25 }
 0x6a1   : > { %v1454_v49 = vpop.permute.xlu1 %1453 }
 0x6a2   : > { %v1463_v50 = vsel %vm1349_vm6, %v1452_v46, %v1454_v49  ;;  %v1456_v51 = vpop.permute.xlu0 %1455 }
 0x6a3   : > { %2077 = vst [vmem:[%s3083_s11 + $0xf] sm:$0xfe] %v1463_v50 }
 0x6a5   : > { %v1458_v52 = vpop.permute.xlu1 %1457 }
 0x6a6   : > { %v1464_v55 = vsel %vm1349_vm6, %v1456_v51, %v1458_v52  ;;  %v1460_v56 = vpop.permute.xlu0 %1459 }
 0x6a7   : > { %2078 = vst [vmem:[%s3083_s11 + $0x17] sm:$0xff] %v1464_v55 }
 0x6a9   : > { %v1462_v58 = vpop.permute.xlu1 %1461 }
 0x6aa   : > { %v1465_v59 = vsel %vm1349_vm6, %v1460_v56, %v1462_v58 }
 0x6ab   : > { %2079 = vst [vmem:[%s3083_s11 + $0x1f] sm:$0x1] %v1465_v59  ;;  %v1558_v2 = vpop.permute.xlu0 %1557 }
 0x6ad   : > { %v1560_v44 = vpop.permute.xlu1 %1559 }
 0x6ae   : > { %v1569_v45 = vsel %vm1349_vm6, %v1558_v2, %v1560_v44 }
 0x6af   : > { %2080 = vst [vmem:[%s3083_s11 + $0x1f] sm:$0xfe] %v1569_v45 }
 0x6b3   : > { %v1562_v12 = vpop.permute.xlu0 %1561  ;;  %v1564_v60 = vpop.permute.xlu1 %1563 }
 0x6b4   : > { %v1570_v57 = vsel %vm1349_vm6, %v1562_v12, %v1564_v60 }
 0x6b5   : > { %2081 = vst [vmem:[%s3083_s11 + $0x27] sm:$0xff] %v1570_v57 }
 0x6b7   : > { %v1566_v48 = vpop.permute.xlu0 %1565  ;;  %v1568_v0 = vpop.permute.xlu1 %1567 }
 0x6b8   : > { %v1571_v14 = vsel %vm1349_vm6, %v1566_v48, %v1568_v0 }
 0x6b9   : > { %2082 = vst [vmem:[%s3083_s11 + $0x2f] sm:$0x1] %v1571_v14 }
 0x6bb   : > { %v1688_v63 = vpop.permute.xlu0 %1687  ;;  %v1690_v61 = vpop.permute.xlu1 %1689 }
 0x6bc   : > { %v1699_v62 = vsel %vm1349_vm6, %v1688_v63, %v1690_v61 }
 0x6bd   : > { %2083 = vst [vmem:[%s3083_s11 + $0x2f] sm:$0xfe] %v1699_v62 }
 0x6bf   : > { %v1692_v1 = vpop.permute.xlu0 %1691  ;;  %v1694_v41 = vpop.permute.xlu1 %1693 }
 0x6c0   : > { %v1700_v53 = vsel %vm1349_vm6, %v1692_v1, %v1694_v41 }
 0x6c1   : > { %2084 = vst [vmem:[%s3083_s11 + $0x37] sm:$0xff] %v1700_v53 }
 0x6c3   : > { %v1696_v54 = vpop.permute.xlu0 %1695  ;;  %v1698_v3 = vpop.permute.xlu1 %1697 }
 0x6c4   : > { %v1701_v4 = vsel %vm1349_vm6, %v1696_v54, %v1698_v3 }
 0x6c5   : > { %2085 = vst [vmem:[%s3083_s11 + $0x3f] sm:$0x1] %v1701_v4 }
 0x704   : > { %v1800_v27 = vpop.permute.xlu0 %1799 }
 0x705   : > { %1806 = vst.msk [vmem:[%s365_s12] sm:$0xff] %vm1805_vm5, %v1800_v27 }
 0x706   : > { %v1802_v9 = vpop.permute.xlu1 %1801 }
 0x707   : > { %1807 = vst.msk [vmem:[%s365_s12 + $0x8] sm:$0xff] %vm1805_vm5, %v1802_v9 }
 0x708   : > { %v1831_v10 = vpop.permute.xlu0 %1830 }
 0x709   : > { %2086 = vst.msk [vmem:[%s365_s12 + $0x10] sm:$0xff] %vm1805_vm5, %v1831_v10 }
 0x70a   : > { %v1833_v16 = vpop.permute.xlu1 %1832 }
 0x70b   : > { %2087 = vst.msk [vmem:[%s365_s12 + $0x18] sm:$0xff] %vm1805_vm5, %v1833_v16 }
 0x70c   : > { %v1860_v5 = vpop.permute.xlu0 %1859 }
 0x70d   : > { %2088 = vst.msk [vmem:[%s365_s12 + $0x20] sm:$0xff] %vm1805_vm5, %v1860_v5 }
 0x70e   : > { %v1862_v7 = vpop.permute.xlu1 %1861 }
 0x70f   : > { %2089 = vst.msk [vmem:[%s365_s12 + $0x28] sm:$0xff] %vm1805_vm5, %v1862_v7 }
 0x710   : > { %v1885_v29 = vpop.permute.xlu0 %1884 }
 0x711   : > { %2090 = vst.msk [vmem:[%s365_s12 + $0x30] sm:$0xff] %vm1805_vm5, %v1885_v29 }
 0x712   : > { %v1887_v19 = vpop.permute.xlu1 %1886 }
 0x713   : > { %2091 = vst.msk [vmem:[%s365_s12 + $0x38] sm:$0xff] %vm1805_vm5, %v1887_v19 }
 0x714 PF: > { %s20_s30 = sadd.s32 1, %s2440_s30  }
 0x715   : > { %p17_p4 = scmp.ge.s32.totalorder %s20_s30, 4  }
 0x717   :  { %19 = sbr.rel (!%p17_p4) target bundleno = 1 (0x1), region = 107 }

</bundles_post_ra>
